<compile_context>
chip_gen: v7x
topology: tpu7x:2x2x1
jax: 0.10.0
libtpu: 0.0.40
codegen_flags: <defaults>
</compile_context>

<pallas_src>
import functools

import jax
import jax.numpy as jnp
from jax.experimental import pallas as pl
from jax.experimental.pallas import tpu as pltpu


def _seres2_kernel(
    x_ref,
    wpre_ref, bpre_ref, gpre_ref, hpre_ref,
    wres_ref, bres_ref, gres_ref, hres_ref,
    wpost_ref, bpost_ref, gpost_ref, hpost_ref,
    we1t_ref, be1_ref, we2_ref, be2_ref,
    o_ref,
    *, t_len, scale, width, kernels, dilation, pad,
):
    f32 = jnp.float32
    bf16 = jnp.bfloat16

    # ---- preblock: Conv1d(C, C, 1) -> ReLU -> BN (folded, eval mode) ----
    # bf16 weights x bf16 activations, f32 accumulate on the MXU.
    v = jnp.dot(wpre_ref[...], x_ref[0].astype(bf16), preferred_element_type=f32)
    v = v + bpre_ref[...]
    y = gpre_ref[...] * jnp.maximum(v, 0.0) + hpre_ref[...]            # [C, T] f32

    # ---- per-tap shift / boundary mask, hoisted out of the group loop ----
    col = jax.lax.broadcasted_iota(jnp.int32, (width, t_len), 1)
    taps_meta = []                                                      # (shift, mask|None)
    for k in range(kernels):
        off = k * dilation - pad                                        # tap reads inp[:, t+off]
        if off == 0:
            taps_meta.append((0, None))
        elif off > 0:
            taps_meta.append(((-off) % t_len, col < (t_len - off)))     # zero the tail
        else:
            taps_meta.append(((-off) % t_len, col >= (-off)))           # zero the head

    # ---- Res2Block: `scale` groups of `width`; group 0 passes straight through ----
    z_groups = [y[0:width, :].astype(bf16)]
    base = jnp.zeros((width, t_len), f32)
    for s in range(1, scale):
        inp = y[s * width:(s + 1) * width, :] + base                    # [W, T] f32
        taps = []
        for shift, mask in taps_meta:
            t = pltpu.roll(inp, shift=shift, axis=1) if shift else inp  # XLU lane rotate
            if mask is not None:
                t = jnp.where(mask, t, 0.0)
            taps.append(t)
        stacked = jnp.concatenate(taps, axis=0).astype(bf16)            # [K*W, T] bf16
        # one fused matmul per group: contraction dim K*width instead of K x width
        acc = jnp.dot(wres_ref[s - 1], stacked, preferred_element_type=f32)
        acc = acc + bres_ref[s - 1]
        base = gres_ref[s - 1] * jnp.maximum(acc, 0.0) + hres_ref[s - 1]
        z_groups.append(base.astype(bf16))

    z = jnp.concatenate(z_groups, axis=0)                               # [C, T] bf16

    # ---- postblock: Conv1d(C, C, 1) -> ReLU -> BN (folded) ----
    v = jnp.dot(wpost_ref[...], z, preferred_element_type=f32) + bpost_ref[...]
    u = gpost_ref[...] * jnp.maximum(v, 0.0) + hpost_ref[...]           # [C, T] f32

    # ---- squeeze & excitation (tiny MLP; broadcast + reduce, no N=1 matmuls) ----
    m = jnp.sum(u, axis=-1, keepdims=True) * (1.0 / t_len)              # [C, 1]
    e1 = jnp.sum(we1t_ref[...] * m, axis=0, keepdims=True) + be1_ref[...]   # [1, bneck]
    e1 = jnp.maximum(e1, 0.0)
    e2 = jnp.sum(we2_ref[...] * e1, axis=1, keepdims=True) + be2_ref[...]   # [C, 1]
    gate = 1.0 / (1.0 + jnp.exp(-e2))                                   # sigmoid, [C, 1]

    # ---- scale + residual; re-read the input block (not kept live across the body) ----
    o_ref[0] = (u * gate + x_ref[0]).astype(o_ref.dtype)


def seres2_block(x, params, *, scale, kernels, dilation):
    """x: [B, C, T] float32; returns [B, C, T] float32 (SERes2Block forward, eval-mode BN)."""
    B, C, T = x.shape
    assert C % scale == 0, "channels must be divisible by scale"
    width = C // scale
    assert width % 8 == 0, "channel-group width should be sublane aligned (multiple of 8)"
    assert T % 128 == 0, "time dim must be lane aligned (multiple of 128) for this kernel"
    pad = (kernels - 1) * dilation // 2
    bneck = params["we1"].shape[0]

    f32 = jnp.float32
    bf16 = jnp.bfloat16
    col = lambda a: a.reshape(-1, 1).astype(f32)

    # Fuse the K taps into the weight: W_f[s, o, k*width + i] = wres[s, k, o, i]
    wres_fused = jnp.transpose(params["wres"], (0, 2, 1, 3)).reshape(
        scale - 1, width, kernels * width).astype(bf16)

    kern = functools.partial(
        _seres2_kernel, t_len=T, scale=scale, width=width,
        kernels=kernels, dilation=dilation, pad=pad)

    def full(shape):
        return pl.BlockSpec(shape, lambda b, _n=len(shape): (0,) * _n)

    out = pl.pallas_call(
        kern,
        out_shape=jax.ShapeDtypeStruct((B, C, T), f32),
        grid=(B,),
        in_specs=[
            pl.BlockSpec((1, C, T), lambda b: (b, 0, 0)),            # x, one batch / step
            full((C, C)), full((C, 1)), full((C, 1)), full((C, 1)),  # preblock
            full((scale - 1, width, kernels * width)),               # res2 fused conv weights
            full((scale - 1, width, 1)),                             # res2 conv bias
            full((scale - 1, width, 1)),                             # res2 BN scale
            full((scale - 1, width, 1)),                             # res2 BN shift
            full((C, C)), full((C, 1)), full((C, 1)), full((C, 1)),  # postblock
            full((C, bneck)), full((1, bneck)),                      # SE linear 1 (W^T, b)
            full((C, bneck)), full((C, 1)),                          # SE linear 2 (W, b)
        ],
        out_specs=pl.BlockSpec((1, C, T), lambda b: (b, 0, 0)),
        compiler_params=pltpu.CompilerParams(
            dimension_semantics=("parallel",),
            vmem_limit_bytes=48 * 1024 * 1024),
    )(
        x.astype(f32),
        params["wpre"].astype(bf16), col(params["bpre"]),
        col(params["gpre"]), col(params["hpre"]),
        wres_fused,
        params["bres"][..., None].astype(f32),
        params["gres"][..., None].astype(f32),
        params["hres"][..., None].astype(f32),
        params["wpost"].astype(bf16), col(params["bpost"]),
        col(params["gpost"]), col(params["hpost"]),
        params["we1"].T.astype(f32), params["be1"].reshape(1, -1).astype(f32),
        params["we2"].astype(f32), col(params["be2"]),
    )
    return out


def _reference(x, params, *, scale, kernels, dilation):
    """Pure-JAX reference of the PyTorch forward (eval-mode BN folded the same way)."""
    HI = jax.lax.Precision.HIGHEST
    B, C, T = x.shape
    width = C // scale
    pad = (kernels - 1) * dilation // 2

    def relu_bn(v, g, h):
        return g[None, :, None] * jnp.maximum(v, 0.0) + h[None, :, None]

    # preblock
    v = jnp.einsum("oc,bct->bot", params["wpre"], x, precision=HI) + params["bpre"][None, :, None]
    y = relu_bn(v, params["gpre"], params["hpre"])

    # res2block
    groups = [y[:, s * width:(s + 1) * width, :] for s in range(scale)]
    outs = [groups[0]]
    base = jnp.zeros_like(groups[0])
    for s in range(1, scale):
        inp = groups[s] + base
        conv = jax.lax.conv_general_dilated(
            inp,
            params["wres"][s - 1].transpose(1, 2, 0),   # [K,O,I] -> [O,I,K]
            window_strides=(1,),
            padding=[(pad, pad)],
            rhs_dilation=(dilation,),
            dimension_numbers=("NCH", "OIH", "NCH"),
            precision=HI,
        ) + params["bres"][s - 1][None, :, None]
        base = relu_bn(conv, params["gres"][s - 1], params["hres"][s - 1])
        outs.append(base)
    z = jnp.concatenate(outs, axis=1)

    # postblock
    v = jnp.einsum("oc,bct->bot", params["wpost"], z, precision=HI) + params["bpost"][None, :, None]
    u = relu_bn(v, params["gpost"], params["hpost"])

    # squeeze & excitation + residual
    m = u.mean(axis=-1)
    e1 = jnp.maximum(jnp.einsum("bc,oc->bo", m, params["we1"], precision=HI) + params["be1"], 0.0)
    gate = jax.nn.sigmoid(jnp.einsum("bo,co->bc", e1, params["we2"], precision=HI) + params["be2"])
    return u * gate[..., None] + x


if __name__ == "__main__":
    B, C, T = 2, 64, 128
    scale, kernels, dilation, bneck = 4, 3, 2, 32
    width = C // scale

    keys = list(jax.random.split(jax.random.PRNGKey(0), 32))
    kidx = [0]

    def nk():
        k = keys[kidx[0]]
        kidx[0] += 1
        return k

    def nrm(shape, s=0.1):
        return s * jax.random.normal(nk(), shape, dtype=jnp.float32)

    def bn_fold(shape, eps=1e-5):
        # eval-mode BatchNorm1d folded to per-channel scale g and shift h
        gamma = 1.0 + 0.1 * jax.random.normal(nk(), shape, jnp.float32)
        beta = 0.1 * jax.random.normal(nk(), shape, jnp.float32)
        mean = 0.1 * jax.random.normal(nk(), shape, jnp.float32)
        var = 1.0 + 0.1 * jnp.abs(jax.random.normal(nk(), shape, jnp.float32))
        g = gamma * jax.lax.rsqrt(var + eps)
        return g, beta - mean * g

    x = jax.random.normal(nk(), (B, C, T), dtype=jnp.float32)

    gpre, hpre = bn_fold((C,))
    gres, hres = bn_fold((scale - 1, width))
    gpost, hpost = bn_fold((C,))
    params = {
        "wpre": nrm((C, C)), "bpre": nrm((C,)), "gpre": gpre, "hpre": hpre,
        # wres layout: [scale-1, K, out_width, in_width]
        "wres": nrm((scale - 1, kernels, width, width)), "bres": nrm((scale - 1, width)),
        "gres": gres, "hres": hres,
        "wpost": nrm((C, C)), "bpost": nrm((C,)), "gpost": gpost, "hpost": hpost,
        "we1": nrm((bneck, C)), "be1": nrm((bneck,)),
        "we2": nrm((C, bneck)), "be2": nrm((C,)),
    }

    out = seres2_block(x, params, scale=scale, kernels=kernels, dilation=dilation)
    out = jax.block_until_ready(out)

    ref = _reference(x, params, scale=scale, kernels=kernels, dilation=dilation)
    assert out.shape == (B, C, T)
    # bf16 MXU operands vs HIGHEST-precision f32 reference -> tolerance reflects bf16 matmuls.
    assert bool(jnp.allclose(out, ref, atol=3e-2, rtol=3e-2)), "mismatch vs pure-JAX reference"

    print("KERNEL_OK")
</pallas_src>

<mosaic_0001>
module attributes {stable_mosaic.version = 11 : i64} {
  func.func @_seres2_kernel(%arg0: i32, %arg1: memref<1x64x128xf32, #tpu.memory_space<vmem>>, %arg2: memref<64x64xbf16, #tpu.memory_space<vmem>>, %arg3: memref<64x1xf32, #tpu.memory_space<vmem>>, %arg4: memref<64x1xf32, #tpu.memory_space<vmem>>, %arg5: memref<64x1xf32, #tpu.memory_space<vmem>>, %arg6: memref<3x16x48xbf16, #tpu.memory_space<vmem>>, %arg7: memref<3x16x1xf32, #tpu.memory_space<vmem>>, %arg8: memref<3x16x1xf32, #tpu.memory_space<vmem>>, %arg9: memref<3x16x1xf32, #tpu.memory_space<vmem>>, %arg10: memref<64x64xbf16, #tpu.memory_space<vmem>>, %arg11: memref<64x1xf32, #tpu.memory_space<vmem>>, %arg12: memref<64x1xf32, #tpu.memory_space<vmem>>, %arg13: memref<64x1xf32, #tpu.memory_space<vmem>>, %arg14: memref<64x32xf32, #tpu.memory_space<vmem>>, %arg15: memref<1x32xf32, #tpu.memory_space<vmem>>, %arg16: memref<64x32xf32, #tpu.memory_space<vmem>>, %arg17: memref<64x1xf32, #tpu.memory_space<vmem>>, %arg18: memref<1x64x128xf32, #tpu.memory_space<vmem>>) attributes {dimension_semantics = [#tpu.dimension_semantics<parallel>], iteration_bounds = array<i64: 2>, scalar_prefetch = 0 : i64, scratch_operands = 0 : i64, tpu.core_type = #tpu.core_type<tc>, window_params = [{transform_indices = @transform_0, window_bounds = array<i64: 1, 64, 128>}, {pipeline_mode = #tpu.pipeline_mode<synchronous>, transform_indices = @transform_1, window_bounds = array<i64: 64, 64>}, {pipeline_mode = #tpu.pipeline_mode<synchronous>, transform_indices = @transform_2, window_bounds = array<i64: 64, 1>}, {pipeline_mode = #tpu.pipeline_mode<synchronous>, transform_indices = @transform_3, window_bounds = array<i64: 64, 1>}, {pipeline_mode = #tpu.pipeline_mode<synchronous>, transform_indices = @transform_4, window_bounds = array<i64: 64, 1>}, {pipeline_mode = #tpu.pipeline_mode<synchronous>, transform_indices = @transform_5, window_bounds = array<i64: 3, 16, 48>}, {pipeline_mode = #tpu.pipeline_mode<synchronous>, transform_indices = @transform_6, window_bounds = array<i64: 3, 16, 1>}, {pipeline_mode = #tpu.pipeline_mode<synchronous>, transform_indices = @transform_7, window_bounds = array<i64: 3, 16, 1>}, {pipeline_mode = #tpu.pipeline_mode<synchronous>, transform_indices = @transform_8, window_bounds = array<i64: 3, 16, 1>}, {pipeline_mode = #tpu.pipeline_mode<synchronous>, transform_indices = @transform_9, window_bounds = array<i64: 64, 64>}, {pipeline_mode = #tpu.pipeline_mode<synchronous>, transform_indices = @transform_10, window_bounds = array<i64: 64, 1>}, {pipeline_mode = #tpu.pipeline_mode<synchronous>, transform_indices = @transform_11, window_bounds = array<i64: 64, 1>}, {pipeline_mode = #tpu.pipeline_mode<synchronous>, transform_indices = @transform_12, window_bounds = array<i64: 64, 1>}, {pipeline_mode = #tpu.pipeline_mode<synchronous>, transform_indices = @transform_13, window_bounds = array<i64: 64, 32>}, {pipeline_mode = #tpu.pipeline_mode<synchronous>, transform_indices = @transform_14, window_bounds = array<i64: 1, 32>}, {pipeline_mode = #tpu.pipeline_mode<synchronous>, transform_indices = @transform_15, window_bounds = array<i64: 64, 32>}, {pipeline_mode = #tpu.pipeline_mode<synchronous>, transform_indices = @transform_16, window_bounds = array<i64: 64, 1>}, {transform_indices = @transform_17, window_bounds = array<i64: 1, 64, 128>}]} {
    %c0 = arith.constant 0 : index
    %c0_0 = arith.constant 0 : index
    %0 = vector.load %arg2[%c0, %c0_0] : memref<64x64xbf16, #tpu.memory_space<vmem>>, vector<64x64xbf16>
    %c0_1 = arith.constant 0 : index
    %c0_2 = arith.constant 0 : index
    %c0_3 = arith.constant 0 : index
    %1 = vector.load %arg1[%c0_1, %c0_2, %c0_3] : memref<1x64x128xf32, #tpu.memory_space<vmem>>, vector<1x64x128xf32>
    %2 = vector.shape_cast %1 : vector<1x64x128xf32> to vector<64x128xf32>
    %3 = arith.truncf %2 : vector<64x128xf32> to vector<64x128xbf16>
    %cst = arith.constant dense<0.000000e+00> : vector<64x128xf32>
    %4 = tpu.matmul %0, %3, %cst {dimension_numbers = #tpu.dot_dimension_numbers<[1], [0], [0], [1], [0, 0, 1, 1], [], []>} : vector<64x64xbf16>, vector<64x128xbf16>, vector<64x128xf32> -> vector<64x128xf32>
    %c0_4 = arith.constant 0 : index
    %c0_5 = arith.constant 0 : index
    %5 = vector.load %arg3[%c0_4, %c0_5] : memref<64x1xf32, #tpu.memory_space<vmem>>, vector<64x1xf32>
    %6 = vector.broadcast %5 : vector<64x1xf32> to vector<64x128xf32>
    %7 = arith.addf %4, %6 : vector<64x128xf32>
    %c0_6 = arith.constant 0 : index
    %c0_7 = arith.constant 0 : index
    %8 = vector.load %arg4[%c0_6, %c0_7] : memref<64x1xf32, #tpu.memory_space<vmem>>, vector<64x1xf32>
    %cst_8 = arith.constant 0.000000e+00 : f32
    %9 = vector.broadcast %cst_8 : f32 to vector<64x128xf32>
    %10 = arith.maximumf %7, %9 : vector<64x128xf32>
    %11 = vector.broadcast %8 : vector<64x1xf32> to vector<64x128xf32>
    %12 = arith.mulf %11, %10 : vector<64x128xf32>
    %c0_9 = arith.constant 0 : index
    %c0_10 = arith.constant 0 : index
    %13 = vector.load %arg5[%c0_9, %c0_10] : memref<64x1xf32, #tpu.memory_space<vmem>>, vector<64x1xf32>
    %14 = vector.broadcast %13 : vector<64x1xf32> to vector<64x128xf32>
    %15 = arith.addf %12, %14 : vector<64x128xf32>
    %16 = tpu.iota {dimensions = array<i32: 1>} : vector<16x128xi32>
    %c2_i32 = arith.constant 2 : i32
    %17 = vector.broadcast %c2_i32 : i32 to vector<16x128xi32>
    %18 = arith.cmpi sge, %16, %17 : vector<16x128xi32>
    %c126_i32 = arith.constant 126 : i32
    %19 = vector.broadcast %c126_i32 : i32 to vector<16x128xi32>
    %20 = arith.cmpi slt, %16, %19 : vector<16x128xi32>
    %21 = vector.extract_strided_slice %15 {offsets = [0, 0], sizes = [16, 128], strides = [1, 1]} : vector<64x128xf32> to vector<16x128xf32>
    %22 = arith.truncf %21 : vector<16x128xf32> to vector<16x128xbf16>
    %cst_11 = arith.constant 0.000000e+00 : f32
    %23 = vector.broadcast %cst_11 : f32 to vector<16x128xf32>
    %24 = vector.extract_strided_slice %15 {offsets = [16, 0], sizes = [16, 128], strides = [1, 1]} : vector<64x128xf32> to vector<16x128xf32>
    %25 = arith.addf %24, %23 : vector<16x128xf32>
    %c2_i32_12 = arith.constant 2 : i32
    %26 = tpu.dynamic_rotate %25 by %c2_i32_12 dim 1 : vector<16x128xf32>, i32 -> vector<16x128xf32>
    %cst_13 = arith.constant 0.000000e+00 : f32
    %27 = vector.broadcast %cst_13 : f32 to vector<16x128xf32>
    %28 = arith.select %18, %26, %27 : vector<16x128xi1>, vector<16x128xf32>
    %c126_i32_14 = arith.constant 126 : i32
    %29 = tpu.dynamic_rotate %25 by %c126_i32_14 dim 1 : vector<16x128xf32>, i32 -> vector<16x128xf32>
    %cst_15 = arith.constant 0.000000e+00 : f32
    %30 = vector.broadcast %cst_15 : f32 to vector<16x128xf32>
    %31 = arith.select %20, %29, %30 : vector<16x128xi1>, vector<16x128xf32>
    %32 = tpu.concatenate %28, %25, %31 in 0 : vector<16x128xf32>, vector<16x128xf32>, vector<16x128xf32> -> vector<48x128xf32>
    %33 = arith.truncf %32 : vector<48x128xf32> to vector<48x128xbf16>
    %c0_16 = arith.constant 0 : index
    %c0_17 = arith.constant 0 : index
    %c0_18 = arith.constant 0 : index
    %34 = vector.load %arg6[%c0_16, %c0_17, %c0_18] : memref<3x16x48xbf16, #tpu.memory_space<vmem>>, vector<1x16x48xbf16>
    %35 = vector.shape_cast %34 : vector<1x16x48xbf16> to vector<16x48xbf16>
    %cst_19 = arith.constant dense<0.000000e+00> : vector<16x128xf32>
    %36 = tpu.matmul %35, %33, %cst_19 {dimension_numbers = #tpu.dot_dimension_numbers<[1], [0], [0], [1], [0, 0, 1, 1], [], []>} : vector<16x48xbf16>, vector<48x128xbf16>, vector<16x128xf32> -> vector<16x128xf32>
    %c0_20 = arith.constant 0 : index
    %c0_21 = arith.constant 0 : index
    %c0_22 = arith.constant 0 : index
    %37 = vector.load %arg7[%c0_20, %c0_21, %c0_22] : memref<3x16x1xf32, #tpu.memory_space<vmem>>, vector<1x16x1xf32>
    %38 = vector.shape_cast %37 : vector<1x16x1xf32> to vector<16x1xf32>
    %39 = vector.broadcast %38 : vector<16x1xf32> to vector<16x128xf32>
    %40 = arith.addf %36, %39 : vector<16x128xf32>
    %c0_23 = arith.constant 0 : index
    %c0_24 = arith.constant 0 : index
    %c0_25 = arith.constant 0 : index
    %41 = vector.load %arg8[%c0_23, %c0_24, %c0_25] : memref<3x16x1xf32, #tpu.memory_space<vmem>>, vector<1x16x1xf32>
    %42 = vector.shape_cast %41 : vector<1x16x1xf32> to vector<16x1xf32>
    %cst_26 = arith.constant 0.000000e+00 : f32
    %43 = vector.broadcast %cst_26 : f32 to vector<16x128xf32>
    %44 = arith.maximumf %40, %43 : vector<16x128xf32>
    %45 = vector.broadcast %42 : vector<16x1xf32> to vector<16x128xf32>
    %46 = arith.mulf %45, %44 : vector<16x128xf32>
    %c0_27 = arith.constant 0 : index
    %c0_28 = arith.constant 0 : index
    %c0_29 = arith.constant 0 : index
    %47 = vector.load %arg9[%c0_27, %c0_28, %c0_29] : memref<3x16x1xf32, #tpu.memory_space<vmem>>, vector<1x16x1xf32>
    %48 = vector.shape_cast %47 : vector<1x16x1xf32> to vector<16x1xf32>
    %49 = vector.broadcast %48 : vector<16x1xf32> to vector<16x128xf32>
    %50 = arith.addf %46, %49 : vector<16x128xf32>
    %51 = arith.truncf %50 : vector<16x128xf32> to vector<16x128xbf16>
    %52 = vector.extract_strided_slice %15 {offsets = [32, 0], sizes = [16, 128], strides = [1, 1]} : vector<64x128xf32> to vector<16x128xf32>
    %53 = arith.addf %52, %50 : vector<16x128xf32>
    %c2_i32_30 = arith.constant 2 : i32
    %54 = tpu.dynamic_rotate %53 by %c2_i32_30 dim 1 : vector<16x128xf32>, i32 -> vector<16x128xf32>
    %cst_31 = arith.constant 0.000000e+00 : f32
    %55 = vector.broadcast %cst_31 : f32 to vector<16x128xf32>
    %56 = arith.select %18, %54, %55 : vector<16x128xi1>, vector<16x128xf32>
    %c126_i32_32 = arith.constant 126 : i32
    %57 = tpu.dynamic_rotate %53 by %c126_i32_32 dim 1 : vector<16x128xf32>, i32 -> vector<16x128xf32>
    %cst_33 = arith.constant 0.000000e+00 : f32
    %58 = vector.broadcast %cst_33 : f32 to vector<16x128xf32>
    %59 = arith.select %20, %57, %58 : vector<16x128xi1>, vector<16x128xf32>
    %60 = tpu.concatenate %56, %53, %59 in 0 : vector<16x128xf32>, vector<16x128xf32>, vector<16x128xf32> -> vector<48x128xf32>
    %61 = arith.truncf %60 : vector<48x128xf32> to vector<48x128xbf16>
    %c1 = arith.constant 1 : index
    %c0_34 = arith.constant 0 : index
    %c0_35 = arith.constant 0 : index
    %62 = vector.load %arg6[%c1, %c0_34, %c0_35] : memref<3x16x48xbf16, #tpu.memory_space<vmem>>, vector<1x16x48xbf16>
    %63 = vector.shape_cast %62 : vector<1x16x48xbf16> to vector<16x48xbf16>
    %cst_36 = arith.constant dense<0.000000e+00> : vector<16x128xf32>
    %64 = tpu.matmul %63, %61, %cst_36 {dimension_numbers = #tpu.dot_dimension_numbers<[1], [0], [0], [1], [0, 0, 1, 1], [], []>} : vector<16x48xbf16>, vector<48x128xbf16>, vector<16x128xf32> -> vector<16x128xf32>
    %c1_37 = arith.constant 1 : index
    %c0_38 = arith.constant 0 : index
    %c0_39 = arith.constant 0 : index
    %65 = vector.load %arg7[%c1_37, %c0_38, %c0_39] : memref<3x16x1xf32, #tpu.memory_space<vmem>>, vector<1x16x1xf32>
    %66 = vector.shape_cast %65 : vector<1x16x1xf32> to vector<16x1xf32>
    %67 = vector.broadcast %66 : vector<16x1xf32> to vector<16x128xf32>
    %68 = arith.addf %64, %67 : vector<16x128xf32>
    %c1_40 = arith.constant 1 : index
    %c0_41 = arith.constant 0 : index
    %c0_42 = arith.constant 0 : index
    %69 = vector.load %arg8[%c1_40, %c0_41, %c0_42] : memref<3x16x1xf32, #tpu.memory_space<vmem>>, vector<1x16x1xf32>
    %70 = vector.shape_cast %69 : vector<1x16x1xf32> to vector<16x1xf32>
    %cst_43 = arith.constant 0.000000e+00 : f32
    %71 = vector.broadcast %cst_43 : f32 to vector<16x128xf32>
    %72 = arith.maximumf %68, %71 : vector<16x128xf32>
    %73 = vector.broadcast %70 : vector<16x1xf32> to vector<16x128xf32>
    %74 = arith.mulf %73, %72 : vector<16x128xf32>
    %c1_44 = arith.constant 1 : index
    %c0_45 = arith.constant 0 : index
    %c0_46 = arith.constant 0 : index
    %75 = vector.load %arg9[%c1_44, %c0_45, %c0_46] : memref<3x16x1xf32, #tpu.memory_space<vmem>>, vector<1x16x1xf32>
    %76 = vector.shape_cast %75 : vector<1x16x1xf32> to vector<16x1xf32>
    %77 = vector.broadcast %76 : vector<16x1xf32> to vector<16x128xf32>
    %78 = arith.addf %74, %77 : vector<16x128xf32>
    %79 = arith.truncf %78 : vector<16x128xf32> to vector<16x128xbf16>
    %80 = vector.extract_strided_slice %15 {offsets = [48, 0], sizes = [16, 128], strides = [1, 1]} : vector<64x128xf32> to vector<16x128xf32>
    %81 = arith.addf %80, %78 : vector<16x128xf32>
    %c2_i32_47 = arith.constant 2 : i32
    %82 = tpu.dynamic_rotate %81 by %c2_i32_47 dim 1 : vector<16x128xf32>, i32 -> vector<16x128xf32>
    %cst_48 = arith.constant 0.000000e+00 : f32
    %83 = vector.broadcast %cst_48 : f32 to vector<16x128xf32>
    %84 = arith.select %18, %82, %83 : vector<16x128xi1>, vector<16x128xf32>
    %c126_i32_49 = arith.constant 126 : i32
    %85 = tpu.dynamic_rotate %81 by %c126_i32_49 dim 1 : vector<16x128xf32>, i32 -> vector<16x128xf32>
    %cst_50 = arith.constant 0.000000e+00 : f32
    %86 = vector.broadcast %cst_50 : f32 to vector<16x128xf32>
    %87 = arith.select %20, %85, %86 : vector<16x128xi1>, vector<16x128xf32>
    %88 = tpu.concatenate %84, %81, %87 in 0 : vector<16x128xf32>, vector<16x128xf32>, vector<16x128xf32> -> vector<48x128xf32>
    %89 = arith.truncf %88 : vector<48x128xf32> to vector<48x128xbf16>
    %c2 = arith.constant 2 : index
    %c0_51 = arith.constant 0 : index
    %c0_52 = arith.constant 0 : index
    %90 = vector.load %arg6[%c2, %c0_51, %c0_52] : memref<3x16x48xbf16, #tpu.memory_space<vmem>>, vector<1x16x48xbf16>
    %91 = vector.shape_cast %90 : vector<1x16x48xbf16> to vector<16x48xbf16>
    %cst_53 = arith.constant dense<0.000000e+00> : vector<16x128xf32>
    %92 = tpu.matmul %91, %89, %cst_53 {dimension_numbers = #tpu.dot_dimension_numbers<[1], [0], [0], [1], [0, 0, 1, 1], [], []>} : vector<16x48xbf16>, vector<48x128xbf16>, vector<16x128xf32> -> vector<16x128xf32>
    %c2_54 = arith.constant 2 : index
    %c0_55 = arith.constant 0 : index
    %c0_56 = arith.constant 0 : index
    %93 = vector.load %arg7[%c2_54, %c0_55, %c0_56] : memref<3x16x1xf32, #tpu.memory_space<vmem>>, vector<1x16x1xf32>
    %94 = vector.shape_cast %93 : vector<1x16x1xf32> to vector<16x1xf32>
    %95 = vector.broadcast %94 : vector<16x1xf32> to vector<16x128xf32>
    %96 = arith.addf %92, %95 : vector<16x128xf32>
    %c2_57 = arith.constant 2 : index
    %c0_58 = arith.constant 0 : index
    %c0_59 = arith.constant 0 : index
    %97 = vector.load %arg8[%c2_57, %c0_58, %c0_59] : memref<3x16x1xf32, #tpu.memory_space<vmem>>, vector<1x16x1xf32>
    %98 = vector.shape_cast %97 : vector<1x16x1xf32> to vector<16x1xf32>
    %cst_60 = arith.constant 0.000000e+00 : f32
    %99 = vector.broadcast %cst_60 : f32 to vector<16x128xf32>
    %100 = arith.maximumf %96, %99 : vector<16x128xf32>
    %101 = vector.broadcast %98 : vector<16x1xf32> to vector<16x128xf32>
    %102 = arith.mulf %101, %100 : vector<16x128xf32>
    %c2_61 = arith.constant 2 : index
    %c0_62 = arith.constant 0 : index
    %c0_63 = arith.constant 0 : index
    %103 = vector.load %arg9[%c2_61, %c0_62, %c0_63] : memref<3x16x1xf32, #tpu.memory_space<vmem>>, vector<1x16x1xf32>
    %104 = vector.shape_cast %103 : vector<1x16x1xf32> to vector<16x1xf32>
    %105 = vector.broadcast %104 : vector<16x1xf32> to vector<16x128xf32>
    %106 = arith.addf %102, %105 : vector<16x128xf32>
    %107 = arith.truncf %106 : vector<16x128xf32> to vector<16x128xbf16>
    %108 = tpu.concatenate %22, %51, %79, %107 in 0 : vector<16x128xbf16>, vector<16x128xbf16>, vector<16x128xbf16>, vector<16x128xbf16> -> vector<64x128xbf16>
    %c0_64 = arith.constant 0 : index
    %c0_65 = arith.constant 0 : index
    %109 = vector.load %arg10[%c0_64, %c0_65] : memref<64x64xbf16, #tpu.memory_space<vmem>>, vector<64x64xbf16>
    %cst_66 = arith.constant dense<0.000000e+00> : vector<64x128xf32>
    %110 = tpu.matmul %109, %108, %cst_66 {dimension_numbers = #tpu.dot_dimension_numbers<[1], [0], [0], [1], [0, 0, 1, 1], [], []>} : vector<64x64xbf16>, vector<64x128xbf16>, vector<64x128xf32> -> vector<64x128xf32>
    %c0_67 = arith.constant 0 : index
    %c0_68 = arith.constant 0 : index
    %111 = vector.load %arg11[%c0_67, %c0_68] : memref<64x1xf32, #tpu.memory_space<vmem>>, vector<64x1xf32>
    %112 = vector.broadcast %111 : vector<64x1xf32> to vector<64x128xf32>
    %113 = arith.addf %110, %112 : vector<64x128xf32>
    %c0_69 = arith.constant 0 : index
    %c0_70 = arith.constant 0 : index
    %114 = vector.load %arg12[%c0_69, %c0_70] : memref<64x1xf32, #tpu.memory_space<vmem>>, vector<64x1xf32>
    %cst_71 = arith.constant 0.000000e+00 : f32
    %115 = vector.broadcast %cst_71 : f32 to vector<64x128xf32>
    %116 = arith.maximumf %113, %115 : vector<64x128xf32>
    %117 = vector.broadcast %114 : vector<64x1xf32> to vector<64x128xf32>
    %118 = arith.mulf %117, %116 : vector<64x128xf32>
    %c0_72 = arith.constant 0 : index
    %c0_73 = arith.constant 0 : index
    %119 = vector.load %arg13[%c0_72, %c0_73] : memref<64x1xf32, #tpu.memory_space<vmem>>, vector<64x1xf32>
    %120 = vector.broadcast %119 : vector<64x1xf32> to vector<64x128xf32>
    %121 = arith.addf %118, %120 : vector<64x128xf32>
    %cst_74 = arith.constant dense<0.000000e+00> : vector<64xf32>
    %122 = vector.multi_reduction <add>, %121, %cst_74 [1] : vector<64x128xf32> to vector<64xf32>
    %123 = vector.shape_cast %122 : vector<64xf32> to vector<64x1xf32>
    %cst_75 = arith.constant 7.812500e-03 : f32
    %124 = vector.broadcast %cst_75 : f32 to vector<64x1xf32>
    %125 = arith.mulf %123, %124 : vector<64x1xf32>
    %c0_76 = arith.constant 0 : index
    %c0_77 = arith.constant 0 : index
    %126 = vector.load %arg14[%c0_76, %c0_77] : memref<64x32xf32, #tpu.memory_space<vmem>>, vector<64x32xf32>
    %127 = vector.broadcast %125 : vector<64x1xf32> to vector<64x32xf32>
    %128 = arith.mulf %126, %127 : vector<64x32xf32>
    %cst_78 = arith.constant dense<0.000000e+00> : vector<32xf32>
    %129 = vector.multi_reduction <add>, %128, %cst_78 [0] : vector<64x32xf32> to vector<32xf32>
    %130 = vector.shape_cast %129 : vector<32xf32> to vector<1x32xf32>
    %c0_79 = arith.constant 0 : index
    %c0_80 = arith.constant 0 : index
    %131 = vector.load %arg15[%c0_79, %c0_80] : memref<1x32xf32, #tpu.memory_space<vmem>>, vector<1x32xf32>
    %132 = arith.addf %130, %131 : vector<1x32xf32>
    %cst_81 = arith.constant 0.000000e+00 : f32
    %133 = vector.broadcast %cst_81 : f32 to vector<1x32xf32>
    %134 = arith.maximumf %132, %133 : vector<1x32xf32>
    %c0_82 = arith.constant 0 : index
    %c0_83 = arith.constant 0 : index
    %135 = vector.load %arg16[%c0_82, %c0_83] : memref<64x32xf32, #tpu.memory_space<vmem>>, vector<64x32xf32>
    %136 = vector.broadcast %134 : vector<1x32xf32> to vector<64x32xf32>
    %137 = arith.mulf %135, %136 : vector<64x32xf32>
    %cst_84 = arith.constant dense<0.000000e+00> : vector<64xf32>
    %138 = vector.multi_reduction <add>, %137, %cst_84 [1] : vector<64x32xf32> to vector<64xf32>
    %139 = vector.shape_cast %138 : vector<64xf32> to vector<64x1xf32>
    %c0_85 = arith.constant 0 : index
    %c0_86 = arith.constant 0 : index
    %140 = vector.load %arg17[%c0_85, %c0_86] : memref<64x1xf32, #tpu.memory_space<vmem>>, vector<64x1xf32>
    %141 = arith.addf %139, %140 : vector<64x1xf32>
    %cst_87 = arith.constant 0.000000e+00 : f32
    %142 = vector.broadcast %cst_87 : f32 to vector<64x1xf32>
    %143 = arith.subf %142, %141 : vector<64x1xf32>
    %144 = math.exp %143 : vector<64x1xf32>
    %cst_88 = arith.constant 1.000000e+00 : f32
    %145 = vector.broadcast %cst_88 : f32 to vector<64x1xf32>
    %146 = arith.addf %145, %144 : vector<64x1xf32>
    %cst_89 = arith.constant 1.000000e+00 : f32
    %147 = vector.broadcast %cst_89 : f32 to vector<64x1xf32>
    %148 = arith.divf %147, %146 : vector<64x1xf32>
    %149 = vector.broadcast %148 : vector<64x1xf32> to vector<64x128xf32>
    %150 = arith.mulf %121, %149 : vector<64x128xf32>
    %c0_90 = arith.constant 0 : index
    %c0_91 = arith.constant 0 : index
    %c0_92 = arith.constant 0 : index
    %151 = vector.load %arg1[%c0_90, %c0_91, %c0_92] : memref<1x64x128xf32, #tpu.memory_space<vmem>>, vector<1x64x128xf32>
    %152 = vector.shape_cast %151 : vector<1x64x128xf32> to vector<64x128xf32>
    %153 = arith.addf %150, %152 : vector<64x128xf32>
    %c0_93 = arith.constant 0 : index
    %c0_94 = arith.constant 0 : index
    %c0_95 = arith.constant 0 : index
    %154 = vector.load %arg18[%c0_93, %c0_94, %c0_95] : memref<1x64x128xf32, #tpu.memory_space<vmem>>, vector<1x64x128xf32>
    %155 = vector.shape_cast %154 : vector<1x64x128xf32> to vector<64x128xf32>
    %156 = vector.shape_cast %153 : vector<64x128xf32> to vector<1x64x128xf32>
    tpu.vector_store %arg18[%c0_93, %c0_94, %c0_95], %156 {strides = array<i32>} : memref<1x64x128xf32, #tpu.memory_space<vmem>>, vector<1x64x128xf32>,
    return
  }
  func.func @transform_0(%arg0: i32) -> (i32, i32, i32) {
    %c0_i32 = arith.constant 0 : i32
    %c0_i32_0 = arith.constant 0 : i32
    %c0_i32_1 = arith.constant 0 : i32
    return %arg0, %c0_i32, %c0_i32_0 : i32, i32, i32
  }
  func.func @transform_1(%arg0: i32) -> (i32, i32) {
    %c0_i32 = arith.constant 0 : i32
    %c0_i32_0 = arith.constant 0 : i32
    %c0_i32_1 = arith.constant 0 : i32
    return %c0_i32, %c0_i32_0 : i32, i32
  }
  func.func @transform_2(%arg0: i32) -> (i32, i32) {
    %c0_i32 = arith.constant 0 : i32
    %c0_i32_0 = arith.constant 0 : i32
    %c0_i32_1 = arith.constant 0 : i32
    return %c0_i32, %c0_i32_0 : i32, i32
  }
  func.func @transform_3(%arg0: i32) -> (i32, i32) {
    %c0_i32 = arith.constant 0 : i32
    %c0_i32_0 = arith.constant 0 : i32
    %c0_i32_1 = arith.constant 0 : i32
    return %c0_i32, %c0_i32_0 : i32, i32
  }
  func.func @transform_4(%arg0: i32) -> (i32, i32) {
    %c0_i32 = arith.constant 0 : i32
    %c0_i32_0 = arith.constant 0 : i32
    %c0_i32_1 = arith.constant 0 : i32
    return %c0_i32, %c0_i32_0 : i32, i32
  }
  func.func @transform_5(%arg0: i32) -> (i32, i32, i32) {
    %c0_i32 = arith.constant 0 : i32
    %c0_i32_0 = arith.constant 0 : i32
    %c0_i32_1 = arith.constant 0 : i32
    %c0_i32_2 = arith.constant 0 : i32
    return %c0_i32, %c0_i32_0, %c0_i32_1 : i32, i32, i32
  }
  func.func @transform_6(%arg0: i32) -> (i32, i32, i32) {
    %c0_i32 = arith.constant 0 : i32
    %c0_i32_0 = arith.constant 0 : i32
    %c0_i32_1 = arith.constant 0 : i32
    %c0_i32_2 = arith.constant 0 : i32
    return %c0_i32, %c0_i32_0, %c0_i32_1 : i32, i32, i32
  }
  func.func @transform_7(%arg0: i32) -> (i32, i32, i32) {
    %c0_i32 = arith.constant 0 : i32
    %c0_i32_0 = arith.constant 0 : i32
    %c0_i32_1 = arith.constant 0 : i32
    %c0_i32_2 = arith.constant 0 : i32
    return %c0_i32, %c0_i32_0, %c0_i32_1 : i32, i32, i32
  }
  func.func @transform_8(%arg0: i32) -> (i32, i32, i32) {
    %c0_i32 = arith.constant 0 : i32
    %c0_i32_0 = arith.constant 0 : i32
    %c0_i32_1 = arith.constant 0 : i32
    %c0_i32_2 = arith.constant 0 : i32
    return %c0_i32, %c0_i32_0, %c0_i32_1 : i32, i32, i32
  }
  func.func @transform_9(%arg0: i32) -> (i32, i32) {
    %c0_i32 = arith.constant 0 : i32
    %c0_i32_0 = arith.constant 0 : i32
    %c0_i32_1 = arith.constant 0 : i32
    return %c0_i32, %c0_i32_0 : i32, i32
  }
  func.func @transform_10(%arg0: i32) -> (i32, i32) {
    %c0_i32 = arith.constant 0 : i32
    %c0_i32_0 = arith.constant 0 : i32
    %c0_i32_1 = arith.constant 0 : i32
    return %c0_i32, %c0_i32_0 : i32, i32
  }
  func.func @transform_11(%arg0: i32) -> (i32, i32) {
    %c0_i32 = arith.constant 0 : i32
    %c0_i32_0 = arith.constant 0 : i32
    %c0_i32_1 = arith.constant 0 : i32
    return %c0_i32, %c0_i32_0 : i32, i32
  }
  func.func @transform_12(%arg0: i32) -> (i32, i32) {
    %c0_i32 = arith.constant 0 : i32
    %c0_i32_0 = arith.constant 0 : i32
    %c0_i32_1 = arith.constant 0 : i32
    return %c0_i32, %c0_i32_0 : i32, i32
  }
  func.func @transform_13(%arg0: i32) -> (i32, i32) {
    %c0_i32 = arith.constant 0 : i32
    %c0_i32_0 = arith.constant 0 : i32
    %c0_i32_1 = arith.constant 0 : i32
    return %c0_i32, %c0_i32_0 : i32, i32
  }
  func.func @transform_14(%arg0: i32) -> (i32, i32) {
    %c0_i32 = arith.constant 0 : i32
    %c0_i32_0 = arith.constant 0 : i32
    %c0_i32_1 = arith.constant 0 : i32
    return %c0_i32, %c0_i32_0 : i32, i32
  }
  func.func @transform_15(%arg0: i32) -> (i32, i32) {
    %c0_i32 = arith.constant 0 : i32
    %c0_i32_0 = arith.constant 0 : i32
    %c0_i32_1 = arith.constant 0 : i32
    return %c0_i32, %c0_i32_0 : i32, i32
  }
  func.func @transform_16(%arg0: i32) -> (i32, i32) {
    %c0_i32 = arith.constant 0 : i32
    %c0_i32_0 = arith.constant 0 : i32
    %c0_i32_1 = arith.constant 0 : i32
    return %c0_i32, %c0_i32_0 : i32, i32
  }
  func.func @transform_17(%arg0: i32) -> (i32, i32, i32) {
    %c0_i32 = arith.constant 0 : i32
    %c0_i32_0 = arith.constant 0 : i32
    %c0_i32_1 = arith.constant 0 : i32
    return %arg0, %c0_i32, %c0_i32_0 : i32, i32, i32
  }
}

</mosaic_0001>

<bundles_post_ra>
// kernel: tpu_custom_call.1
= control target key start
LH: loop header
LB: loop body
LE: loop exit
PB: predicated region body
PF: predicated region fallthrough
CT: control target
= control target key end

     0   :  { %s2793_s0 = inlined_call_operand.vmem [shape: f32[2,64,128], index: 0, kind: input, shape index: {}]   ;;  %s2794_s1 = inlined_call_operand.vmem [shape: bf16[64,64], index: 1, kind: input, shape index: {}]   ;;  %s2795_s2 = inlined_call_operand.vmem [shape: f32[64,1], index: 2, kind: input, shape index: {}]   ;;  %s2796_s3 = inlined_call_operand.vmem [shape: f32[64,1], index: 3, kind: input, shape index: {}]   ;;  %s2797_s4 = inlined_call_operand.vmem [shape: f32[64,1], index: 4, kind: input, shape index: {}]   ;;  %s2798_s5 = inlined_call_operand.vmem [shape: bf16[3,16,48], index: 5, kind: input, shape index: {}]   ;;  %s2799_s6 = inlined_call_operand.vmem [shape: f32[3,16,1], index: 6, kind: input, shape index: {}]   ;;  %s2800_s7 = inlined_call_operand.vmem [shape: f32[3,16,1], index: 7, kind: input, shape index: {}]   ;;  %s2801_s8 = inlined_call_operand.vmem [shape: f32[3,16,1], index: 8, kind: input, shape index: {}]   ;;  %s2802_s9 = inlined_call_operand.vmem [shape: bf16[64,64], index: 9, kind: input, shape index: {}]   ;;  %s2803_s10 = inlined_call_operand.vmem [shape: f32[64,1], index: 10, kind: input, shape index: {}]   ;;  %s2804_s11 = inlined_call_operand.vmem [shape: f32[64,1], index: 11, kind: input, shape index: {}]   ;;  %s2805_s12 = inlined_call_operand.vmem [shape: f32[64,1], index: 12, kind: input, shape index: {}]   ;;  %s2806_s13 = inlined_call_operand.vmem [shape: f32[64,32], index: 13, kind: input, shape index: {}]   ;;  %s2807_s14 = inlined_call_operand.vmem [shape: f32[1,32], index: 14, kind: input, shape index: {}]   ;;  %s2808_s15 = inlined_call_operand.vmem [shape: f32[64,32], index: 15, kind: input, shape index: {}]   ;;  %s2809_s16 = inlined_call_operand.vmem [shape: f32[64,1], index: 16, kind: input, shape index: {}]   ;;  %s2810_s17 = inlined_call_operand.hbm [shape: f32[2,64,128], index: 17, kind: output, shape index: {}]  }
   0x1   :  { %2822 = sst [smem:[#allocation11_spill]] %s2793_s0 }
   0x2   :  { %2823 = sst [smem:[#allocation12_spill]] %s2794_s1 }
   0x3   :  { %2824 = sst [smem:[#allocation13_spill]] %s2810_s17 }
   0x4   :  { %22 = vsyncpa [#allocation3], 0 }
   0x5   :  { %24 = vsyncpa [#allocation3 + $0x1], 0  ;;  %s2218_s24 = smov 0   ;;  %s2220_s25 = smov 0  }
   0x6   :  { %s2222_s26 = smov 0   ;;  %s2224_s27 = smov 0  }
   0x7 LB: > { %2825 = sst [smem:[#allocation5_spill]] %s2106_s24  ;;  %s2239_s28 = sadd.s32 4294967295, %s2118_s27   ;;  %s2118_s27 = sphi %s2224_s27, %s2845_s27   ;;  %s2114_s26 = sphi %s2222_s26, %s2850_s26   ;;  %s2110_s25 = sphi %s2220_s25, %s2849_s25   ;;  %s2106_s24 = sphi %s2218_s24, %s2848_s24  }
   0x8   : > { %2826 = sst [smem:[#allocation6_spill]] %s2114_s26  ;;  %s1767_s29 = sadd.s32 4294967294, %s2118_s27  }
   0x9   : > { %2827 = sst [smem:[#allocation7_spill]] %s2118_s27  ;;  %s2243_s0 = sadd.s32 1, %s2118_s27  }
   0xa   : > { %2828 = sst [smem:[#allocation8_spill]] %s2243_s0  ;;  %s399_s30 = sadd.s32 1, %s2114_s26 }
   0xb   : > { %s396_s18 = ssub.s32 %s2118_s27, %s2243_s0  ;;  %p409_p0 = scmp.ne.s32.totalorder %s2114_s26, %s2110_s25 }
   0xc   : > { %p397_p1 = scmp.eq.s32.totalorder %s396_s18, 0  ;;  %p410_p2 = scmp.eq.s32.totalorder %s2239_s28, 1 }
   0xd   : > { %p415_p3 = scmp.ne.s32.totalorder %s2110_s25, %s2106_s24  ;;  %p416_p4 = scmp.eq.s32.totalorder %s1767_s29, 1 }
   0xe   : > { %s2254_s19 = scalar_select %p397_p1, %s2114_s26, %s399_s30  }
   0xf   : > { %p2256_p5 = por %p410_p2, %p409_p0  ;;  %p2260_p6 = por %p416_p4, %p415_p3 }
  0x10   : > { %2829 = sst [smem:[#allocation9_spill]] %s2254_s19  ;;  %p1770_p7 = scmp.ge.s32.totalorder %s2118_s27, 1 }
  0x11   : > { %s2831_s20 = scalar_select %p2260_p6, 1, 0 }
  0x12   : > { %p490_p8 = scmp.lt.s32.totalorder %s2118_s27, 3 }
  0x13   : > { %2832 = sst [smem:[#allocation10_spill]] %s2831_s20 }
  0x14   : > { %p491_p9 = pnand %p1770_p7, %p490_p8 }
  0x15   : > { %p542_p10 = scmp.lt.s32.totalorder (!%p491_p9), %s2239_s28, 1  ;;  %s2833_s23 = sld [smem:[#allocation12_spill]] (!%p491_p9)  ;;  %vm636_vm0 = vcmask (!%p491_p9), 523264   ;;  %v570_v1 = vld [vmem:[%s2795_s2 + $0x10] sm:$0xff] (!%p491_p9)  ;;  %v2120_v3 = vmov (!%p491_p9), 0   ;;  %v571_v4 = vld [vmem:[%s2795_s2 + $0x18] sm:$0xff] (!%p491_p9)  ;;  %v834_v60 = vlaneseq (!%p491_p9) }
  0x16   : > { %494 = sbr.rel (%p491_p9) target bundleno = 2089 (0x829), region = 88  ;;  %v716_v2 = vld [vmem:[%s2796_s3 + $0x10] sm:$0xff] (!%p491_p9)  ;;  %1973 = vset.pattern.permute.xlu0 (!%p491_p9), %v2120_v3  ;;  %1974 = vset.pattern.permute.xlu1 (!%p491_p9), %v2120_v3  ;;  %s2834_s27 = sld [smem:[#allocation11_spill]] (!%p491_p9)  ;;  %v717_v5 = vld [vmem:[%s2796_s3 + $0x18] sm:$0xff] (!%p491_p9)  ;;  %v2121_v34 = vmov (!%p491_p9), 0.0   ;;  %v573_v46 = vld [vmem:[%s2795_s2 + $0x28] sm:$0xff] (!%p491_p9) }
  0x17   : > { %588 = vperm.xlu0 (!%p491_p9), %1973, %v570_v1   ;;  %742 = vperm.xlu1 (!%p491_p9), %1974, %v716_v2   ;;  %v780_v11 = vld [vmem:[%s2797_s4 + $0x10] sm:$0xff] (!%p491_p9)  ;;  %v781_v12 = vld [vmem:[%s2797_s4 + $0x18] sm:$0xff] (!%p491_p9)  ;;  %s2821_s18 = smov (!%p491_p9), 126   ;;  %s2819_s24 = smov (!%p491_p9), 2   ;;  %v572_v47 = vld [vmem:[%s2795_s2 + $0x20] sm:$0xff] (!%p491_p9)  ;;  %vm2124_vm1 = vmmov (!%p491_p9), 0  }
  0x18   : > { %1891 = vmatprep.subr.bf16.mxu1 (!%p491_p9), %v2121_v34  ;;  %1897 = vmatprep.mubr.msk.bf16.mxu1 (!%p491_p9), %vm2124_vm1, %v2121_v34  ;;  %v859_v50 = vld [vmem:[%s2799_s6 + $0x8] sm:$0xff] (!%p491_p9)  ;;  %v858_v51 = vld [vmem:[%s2799_s6] sm:$0xff] (!%p491_p9)  ;;  %v835_v61 = vand.u32 (!%p491_p9), 127, %v834_v60  ;;  %vm875_vm6 = vcmask (!%p491_p9), 392192   ;;  %s2839_s21 = smov (!%p491_p9), 2   ;;  %s2840_s19 = smov (!%p491_p9), 126  }
  0x19   : > { %v719_v52 = vld [vmem:[%s2796_s3 + $0x28] sm:$0xff] (!%p491_p9)  ;;  %v718_v53 = vld [vmem:[%s2796_s3 + $0x20] sm:$0xff] (!%p491_p9)  ;;  %vm1494_vm7 = vcmask (!%p491_p9), 261120   ;;  %s539_s20 = sand.u32 (!%p491_p9), 1, %s2110_s25   ;;  %s1836_s22 = sshll.u32 (!%p491_p9), %s2239_s28, 10 }
  0x1a   : > { %v921_v54 = vld [vmem:[%s2800_s7 + $0x8] sm:$0xff] (!%p491_p9)  ;;  %v920_v55 = vld [vmem:[%s2800_s7] sm:$0xff] (!%p491_p9)  ;;  %vm836_vm2 = vcmp.ge.s32.totalorder (!%p491_p9), %v835_v61, 2  ;;  %vm837_vm4 = vcmp.lt.s32.totalorder (!%p491_p9), %v835_v61, 126  ;;  %v784_v61 = vld [vmem:[%s2797_s4 + $0x30] sm:$0xff] (!%p491_p9) }
  0x1b   : > { %v2005_v0 = vld [vmem:[%s2833_s23] sm:$0xff] (!%p491_p9)   ;;  %593 = vperm.xlu0 (!%p491_p9), %1973, %v571_v4   ;;  %747 = vperm.xlu1 (!%p491_p9), %1974, %v717_v5   ;;  %v2006_v20 = vld [vmem:[%s2833_s23 + $0x8] sm:$0xff] (!%p491_p9)   ;;  %v2007_v21 = vld [vmem:[%s2833_s23 + $0x10] sm:$0xff] (!%p491_p9)  }
  0x1c   : > { %1873 = vmatprep.mubr.msk.bf16.mxu0 (!%p491_p9), %vm636_vm0, %v2005_v0  ;;  %v2008_v22 = vld [vmem:[%s2833_s23 + $0x18] sm:$0xff] (!%p491_p9)   ;;  %v783_v56 = vld [vmem:[%s2797_s4 + $0x28] sm:$0xff] (!%p491_p9)  ;;  %v782_v57 = vld [vmem:[%s2797_s4 + $0x20] sm:$0xff] (!%p491_p9) }
  0x1d   : > { %s543_s29 = scalar_select %p542_p10, %s2239_s28, 1  ;;  %v937_v58 = vld [vmem:[%s2801_s8 + $0x8] sm:$0xff]  ;;  %v936_v59 = vld [vmem:[%s2801_s8] sm:$0xff]  ;;  %vm2368_vm3 = vmpackc.low %vm836_vm2, %vm836_vm2 }
  0x1e   : > { %vm2376_vm5 = vmpackc.low %vm837_vm4, %vm837_vm4  ;;  %s2752_s28 = scalar_lea.sflag [#allocation3], %s539_s20 }
  0x1f   : > { %s1835_s0 = sshll.u32 %s543_s29, 6  ;;  %798 = vperm.xlu0 %1973, %v780_v11   ;;  %803 = vperm.xlu1 %1974, %v781_v12  }
  0x20   : > { %s2284_s17 = scalar_lea.vmem %s2834_s27, %s1835_s0  ;;  %s2841_s0 = sld [smem:[#allocation13_spill]] }
  0x21   : > { %v556_v6 = vld [vmem:[%s2284_s17] sm:$0xff]  ;;  %v557_v7 = vld [vmem:[%s2284_s17 + $0x8] sm:$0xff]  ;;  %v558_v8 = vld [vmem:[%s2284_s17 + $0x10] sm:$0xff] }
  0x22   : > { %v564_v9 = vpack.c.bf16 %v557_v7, %v556_v6  ;;  %v559_v10 = vld [vmem:[%s2284_s17 + $0x18] sm:$0xff]  ;;  %v560_v14 = vld [vmem:[%s2284_s17 + $0x20] sm:$0xff]  ;;  %v561_v15 = vld [vmem:[%s2284_s17 + $0x28] sm:$0xff] }
  0x23   : > { %v565_v13 = vpack.c.bf16 %v559_v10, %v558_v8  ;;  %v562_v16 = vld [vmem:[%s2284_s17 + $0x30] sm:$0xff]  ;;  %v563_v17 = vld [vmem:[%s2284_s17 + $0x38] sm:$0xff]  ;;  %v566_v18 = vpack.c.bf16 %v561_v15, %v560_v14  ;;  %v2009_v8 = vld [vmem:[%s2798_s5] sm:$0xff]  }
  0x24   : > { %1865 = vmatprep.subr.bf16.mxu0 %v564_v9  ;;  %v567_v19 = vpack.c.bf16 %v563_v17, %v562_v16 }
  0x25   : > { %1866 = vmatpush3.bf16.msra.mxu0 %v564_v9 }
  0x26   : > { %1867 = vmatprep.subr.bf16.mxu0 %v565_v13 }
  0x29   : > { %1868 = vmatpush3.bf16.msra.mxu0 %v565_v13 }
  0x2a   : > { %1869 = vmatprep.subr.bf16.mxu0 %v566_v18 }
  0x2d   : > { %1870 = vmatpush3.bf16.msra.mxu0 %v566_v18 }
  0x2e   : > { %1871 = vmatprep.subr.bf16.mxu0 %v567_v19 }
  0x31   : > { %1872 = vmatpush3.bf16.msra.mxu0 %v567_v19 }
  0x32   : > { %1881 = vmatprep.subr.bf16.mxu0 %v2121_v34 }
  0x34   : > { %1874 = vmatmul.mubr.msk.bf16.vlgmr.msra.gmra.mrb[0].mxu0 %vm636_vm0, %v2006_v20 }
  0x35   : > { %1877 = vmatprep.mubr.msk.bf16.mxu0 %vm636_vm0, %v2007_v21 }
  0x3c   : > { %1878 = vmatmul.mubr.msk.bf16.gmra.mrb[4].mxu0 %vm636_vm0, %v2008_v22 }
  0x3d   : > { %1887 = vmatprep.mubr.msk.bf16.mxu0 %vm2124_vm1, %v2121_v34 }
  0x96   : > { %v589_v23 = vpop.permute.xlu0 %588  ;;  %v743_v24 = vpop.permute.xlu1 %742 }
  0x9a   : > { %v594_v26 = vpop.permute.xlu0 %593  ;;  %v748_v29 = vpop.permute.xlu1 %747 }
  0x9e   : > { %v799_v38 = vpop.permute.xlu0 %798  ;;  %v804_v39 = vpop.permute.xlu1 %803 }
 0x107   : > { %v1875_v25 = vpop.f32.mrb[0].mxu0 }
 0x108   : > { %v692_v27 = vadd.f32 %v1875_v25, %v589_v23  ;;  %v2315_v28 = vpop.f32.mrb[1].mxu0 }
 0x109   : > { %v1876_v30 = vpop.f32.mrb[2].mxu0 }
 0x10a   : > { %v724_v31 = vmax.f32 %v692_v27, 0.0  ;;  %v695_v32 = vadd.f32 %v1876_v30, %v594_v26  ;;  %v2317_v33 = vpop.f32.mrb[3].mxu0 }
 0x10c   : > { %v772_v35 = vmul.f32 %v743_v24, %v724_v31  ;;  %v725_v36 = vmax.f32 %v695_v32, 0.0 }
 0x10e   : > { %v773_v37 = vmul.f32 %v748_v29, %v725_v36  ;;  %v828_v40 = vadd.f32 %v799_v38, %v772_v35 }
 0x10f   : > { %v2321_v44 = vpop.f32.mrb[4].mxu0 }
 0x110   : > { %v829_v41 = vadd.f32 %v804_v39, %v773_v37  ;;  %v699_v45 = vpop.f32.mrb[5].mxu0 }
 0x111   : > { %v2333_v48 = vpop.f32.mrb[6].mxu0 }
 0x112   : > { %v1980_v42 = vpack.i.bf16 %v829_v41, %v828_v40  ;;  %v854_v43 = vpack.c.bf16 %v829_v41, %v828_v40  ;;  %v702_v49 = vpop.f32.mrb[7].mxu0 }
 0x114   : > { %1981 = vrot.lane.b32.xlu1 %v1980_v42, %s2821_s18  ;;  %1976 = vrot.lane.b32.xlu0 %v1980_v42, %s2819_s24 }
 0x118   : > { %603 = vperm.xlu1 %1974, %v573_v46   ;;  %598 = vperm.xlu0 %1973, %v572_v47  }
 0x11c   : > { %867 = vperm.xlu1 %1974, %v859_v50   ;;  %862 = vperm.xlu0 %1973, %v858_v51   ;;  %v575_v51 = vld [vmem:[%s2795_s2 + $0x38] sm:$0xff] }
 0x120   : > { %757 = vperm.xlu1 %1974, %v719_v52   ;;  %752 = vperm.xlu0 %1973, %v718_v53   ;;  %v574_v52 = vld [vmem:[%s2795_s2 + $0x30] sm:$0xff]  ;;  %v1793_v53 = vld [vmem:[%s2799_s6 + $0x18] sm:$0xff] }
 0x124   : > { %931 = vperm.xlu1 %1974, %v921_v54   ;;  %926 = vperm.xlu0 %1973, %v920_v55   ;;  %v1792_v54 = vld [vmem:[%s2799_s6 + $0x10] sm:$0xff]  ;;  %v721_v55 = vld [vmem:[%s2796_s3 + $0x38] sm:$0xff] }
 0x128   : > { %813 = vperm.xlu1 %1974, %v783_v56   ;;  %808 = vperm.xlu0 %1973, %v782_v57   ;;  %v720_v56 = vld [vmem:[%s2796_s3 + $0x30] sm:$0xff]  ;;  %v1803_v57 = vld [vmem:[%s2800_s7 + $0x18] sm:$0xff] }
 0x12c   : > { %945 = vperm.xlu1 %1974, %v937_v58   ;;  %940 = vperm.xlu0 %1973, %v936_v59   ;;  %v1802_v58 = vld [vmem:[%s2800_s7 + $0x10] sm:$0xff]  ;;  %v785_v59 = vld [vmem:[%s2797_s4 + $0x38] sm:$0xff] }
 0x186   : > { %v1977_v62 = vpop.permute.xlu0 %1976  ;;  %v1982_v3 = vpop.permute.xlu1 %1981 }
 0x187   : > { %v1979_v63 = vunpack.i.h.bf16 %v1977_v62  ;;  %v1978_v0 = vunpack.i.l.bf16 %v1977_v62  ;;  %v1984_v4 = vunpack.i.h.bf16 %v1982_v3  ;;  %v1983_v5 = vunpack.i.l.bf16 %v1982_v3  ;;  %v1805_v62 = vld [vmem:[%s2801_s8 + $0x18] sm:$0xff] }
 0x189   : > { %v1784_v2 = vpack.c.bf16 %v1979_v63, %v1978_v0  ;;  %v1787_v7 = vpack.c.bf16 %v1984_v4, %v1983_v5  ;;  %v1804_v63 = vld [vmem:[%s2801_s8 + $0x10] sm:$0xff] }
 0x18b   : > { %1882 = vmatpush3.bf16.msk.msra.mxu0 %vm2368_vm3, %v1784_v2 }
 0x18c   : > { %1883 = vmatprep.subr.bf16.mxu0 %v2121_v34 }
 0x18f   : > { %1884 = vmatpush3.bf16.msra.mxu0 %v854_v43 }
 0x190   : > { %1885 = vmatprep.subr.bf16.mxu0 %v2121_v34 }
 0x193   : > { %1886 = vmatpush3.bf16.msk.msra.mxu0 %vm2376_vm5, %v1787_v7 }
 0x194   : > { %1901 = vmatprep.subr.bf16.mxu0 %v2121_v34 }
 0x196   : > { %1888 = vmatmul.mubr.msk.bf16.vlgmr.msra.gmra.mrb[8].mxu0 %vm875_vm6, %v2009_v8 }
 0x197   : > { %1907 = vmatprep.mubr.msk.bf16.mxu0 %vm2124_vm1, %v2121_v34  ;;  %v599_v9 = vpop.permute.xlu0 %598  ;;  %v604_v10 = vpop.permute.xlu1 %603 }
 0x198   : > { %v700_v17 = vadd.f32 %v699_v45, %v599_v9  ;;  %v703_v20 = vadd.f32 %v702_v49, %v604_v10  ;;  %v2010_v10 = vld [vmem:[%s2798_s5 + $0x8] sm:$0xff]  }
 0x19a   : > { %v726_v25 = vmax.f32 %v700_v17, 0.0  ;;  %v727_v30 = vmax.f32 %v703_v20, 0.0 }
 0x19b   : > { %v863_v11 = vpop.permute.xlu0 %862  ;;  %v868_v12 = vpop.permute.xlu1 %867 }
 0x19f   : > { %v753_v13 = vpop.permute.xlu0 %752  ;;  %v758_v14 = vpop.permute.xlu1 %757 }
 0x1a0   : > { %v774_v31 = vmul.f32 %v753_v13, %v726_v25  ;;  %v775_v37 = vmul.f32 %v758_v14, %v727_v30 }
 0x1a3   : > { %v927_v15 = vpop.permute.xlu0 %926  ;;  %v932_v16 = vpop.permute.xlu1 %931 }
 0x1a7   : > { %v809_v18 = vpop.permute.xlu0 %808  ;;  %v814_v23 = vpop.permute.xlu1 %813 }
 0x1a8   : > { %v830_v38 = vadd.f32 %v809_v18, %v774_v31  ;;  %v831_v42 = vadd.f32 %v814_v23, %v775_v37 }
 0x1ab   : > { %v941_v36 = vpop.permute.xlu0 %940  ;;  %v946_v41 = vpop.permute.xlu1 %945 }
 0x269   : > { %v913_v19 = vpop.f32.mrb[8].mxu0 }
 0x26a   : > { %v914_v21 = vadd.f32 %v913_v19, %v863_v11  ;;  %v1889_v22 = vpop.f32.mrb[9].mxu0 }
 0x26b   : > { %v916_v24 = vpop.f32.mrb[10].mxu0 }
 0x26c   : > { %v922_v26 = vmax.f32 %v914_v21, 0.0  ;;  %v917_v27 = vadd.f32 %v916_v24, %v868_v12  ;;  %v1890_v29 = vpop.f32.mrb[11].mxu0 }
 0x26e   : > { %v934_v32 = vmul.f32 %v927_v15, %v922_v26  ;;  %v923_v35 = vmax.f32 %v917_v27, 0.0 }
 0x270   : > { %v948_v39 = vadd.f32 %v941_v36, %v934_v32  ;;  %v935_v40 = vmul.f32 %v932_v16, %v923_v35 }
 0x272   : > { %v951_v43 = vadd.f32 %v948_v39, %v830_v38  ;;  %v949_v45 = vadd.f32 %v946_v41, %v935_v40 }
 0x274   : > { %v952_v46 = vadd.f32 %v949_v45, %v831_v42  ;;  %v2389_v47 = vpack.c.bf16 %v949_v45, %v948_v39 }
 0x276   : > { %v1990_v49 = vpack.i.bf16 %v952_v46, %v951_v43  ;;  %v966_v50 = vpack.c.bf16 %v952_v46, %v951_v43 }
 0x278   : > { %1991 = vrot.lane.b32.xlu1 %v1990_v49, %s2821_s18  ;;  %1986 = vrot.lane.b32.xlu0 %v1990_v49, %s2839_s21  ;;  %s1771_s18 = sshll.u32 %s539_s20, 6 }
 0x279   : > { %s2719_s29 = scalar_lea.vmem [#allocation2], %s1771_s18 }
 0x27a   : > { %s1705_s30 = sshll.u32 %s2719_s29, 4  ;;  %s2745_s30 = int_to_ptr.vmem [resolvable:$true] %s1705_s30 }
 0x27b   : > { %s2056_s24 = scalar_lea.vmem %s2745_s30, 1024 }
 0x27c   : > { %613 = vperm.xlu1 %1974, %v575_v51   ;;  %608 = vperm.xlu0 %1973, %v574_v52   ;;  %v569_v52 = vld [vmem:[%s2795_s2 + $0x8] sm:$0xff]  ;;  %p2057_p11 = scmp.ne.s32.totalorder %s2745_s30, %s2056_s24 }
 0x27e   : > { %p2058_p12 = pnand %p2057_p11, %p2256_p5 }
 0x280   : > { %981 = vperm.xlu1 %1974, %v1793_v53   ;;  %976 = vperm.xlu0 %1973, %v1792_v54   ;;  %v568_v53 = vld [vmem:[%s2795_s2] sm:$0xff]  ;;  %v715_v54 = vld [vmem:[%s2796_s3 + $0x8] sm:$0xff]  ;;  %p2059_p13 = pneg %p2058_p12 }
 0x284   : > { %767 = vperm.xlu1 %1974, %v721_v55   ;;  %762 = vperm.xlu0 %1973, %v720_v56   ;;  %v714_v55 = vld [vmem:[%s2796_s3] sm:$0xff]  ;;  %v779_v56 = vld [vmem:[%s2797_s4 + $0x8] sm:$0xff] }
 0x288   : > { %1045 = vperm.xlu1 %1974, %v1803_v57   ;;  %1040 = vperm.xlu0 %1973, %v1802_v58   ;;  %v778_v57 = vld [vmem:[%s2797_s4] sm:$0xff]  ;;  %v1809_v58 = vld [vmem:[%s2799_s6 + $0x28] sm:$0xff] }
 0x28c   : > { %823 = vperm.xlu1 %1974, %v785_v59   ;;  %818 = vperm.xlu0 %1973, %v784_v61   ;;  %v1808_v59 = vld [vmem:[%s2799_s6 + $0x20] sm:$0xff]  ;;  %v1819_v61 = vld [vmem:[%s2800_s7 + $0x28] sm:$0xff] }
 0x290   : > { %1060 = vperm.xlu1 %1974, %v1805_v62   ;;  %1055 = vperm.xlu0 %1973, %v1804_v63   ;;  %v1818_v62 = vld [vmem:[%s2800_s7 + $0x20] sm:$0xff]  ;;  %v1821_v63 = vld [vmem:[%s2801_s8 + $0x28] sm:$0xff] }
 0x2ea   : > { %v1987_v0 = vpop.permute.xlu0 %1986  ;;  %v1992_v5 = vpop.permute.xlu1 %1991 }
 0x2eb   : > { %v1989_v2 = vunpack.i.h.bf16 %v1987_v0  ;;  %v1988_v3 = vunpack.i.l.bf16 %v1987_v0  ;;  %v1994_v7 = vunpack.i.h.bf16 %v1992_v5  ;;  %v1993_v8 = vunpack.i.l.bf16 %v1992_v5  ;;  %v1820_v0 = vld [vmem:[%s2801_s8 + $0x20] sm:$0xff]  ;;  %v1191_v5 = vld [vmem:[%s2803_s10 + $0x10] sm:$0xff] }
 0x2ed   : > { %v1796_v4 = vpack.c.bf16 %v1989_v2, %v1988_v3  ;;  %v1799_v9 = vpack.c.bf16 %v1994_v7, %v1993_v8  ;;  %v1190_v2 = vld [vmem:[%s2803_s10 + $0x8] sm:$0xff]  ;;  %v1189_v3 = vld [vmem:[%s2803_s10] sm:$0xff] }
 0x2ee   : > { %v1335_v7 = vld [vmem:[%s2804_s11 + $0x8] sm:$0xff]  ;;  %v1334_v8 = vld [vmem:[%s2804_s11] sm:$0xff] }
 0x2ef   : > { %1892 = vmatpush3.bf16.msk.msra.mxu1 %vm2368_vm3, %v1796_v4  ;;  %v1192_v4 = vld [vmem:[%s2803_s10 + $0x18] sm:$0xff] }
 0x2f0   : > { %1893 = vmatprep.subr.bf16.mxu1 %v2121_v34 }
 0x2f3   : > { %1894 = vmatpush3.bf16.msra.mxu1 %v966_v50 }
 0x2f4   : > { %1895 = vmatprep.subr.bf16.mxu1 %v2121_v34 }
 0x2f7   : > { %1896 = vmatpush3.bf16.msk.msra.mxu1 %vm2376_vm5, %v1799_v9  ;;  %v1336_v9 = vld [vmem:[%s2804_s11 + $0x10] sm:$0xff] }
 0x2fa   : > { %1898 = vmatmul.mubr.msk.bf16.vlgmr.msra.gmra.mrb[0].mxu1 %vm875_vm6, %v2010_v10  ;;  %v1193_v10 = vld [vmem:[%s2803_s10 + $0x20] sm:$0xff] }
 0x2fb   : > { %v609_v11 = vpop.permute.xlu0 %608  ;;  %v614_v12 = vpop.permute.xlu1 %613 }
 0x2fc   : > { %v708_v19 = vadd.f32 %v2321_v44, %v609_v11  ;;  %v711_v22 = vadd.f32 %v2333_v48, %v614_v12  ;;  %v1399_v11 = vld [vmem:[%s2805_s12 + $0x8] sm:$0xff]  ;;  %v1398_v12 = vld [vmem:[%s2805_s12] sm:$0xff] }
 0x2fe   : > { %v728_v27 = vmax.f32 %v708_v19, 0.0  ;;  %v729_v32 = vmax.f32 %v711_v22, 0.0  ;;  %v1339_v19 = vld [vmem:[%s2804_s11 + $0x28] sm:$0xff]  ;;  %v1402_v22 = vld [vmem:[%s2805_s12 + $0x20] sm:$0xff] }
 0x2ff   : > { %v977_v13 = vpop.permute.xlu0 %976  ;;  %v982_v14 = vpop.permute.xlu1 %981 }
 0x303   : > { %v763_v15 = vpop.permute.xlu0 %762  ;;  %v768_v16 = vpop.permute.xlu1 %767 }
 0x304   : > { %v776_v35 = vmul.f32 %v763_v15, %v728_v27  ;;  %v777_v39 = vmul.f32 %v768_v16, %v729_v32  ;;  %v1195_v15 = vld [vmem:[%s2803_s10 + $0x30] sm:$0xff] }
 0x305   : > { %v1400_v16 = vld [vmem:[%s2805_s12 + $0x10] sm:$0xff] }
 0x307   : > { %v1041_v17 = vpop.permute.xlu0 %1040  ;;  %v1046_v18 = vpop.permute.xlu1 %1045 }
 0x30b   : > { %v819_v20 = vpop.permute.xlu0 %818  ;;  %v824_v25 = vpop.permute.xlu1 %823 }
 0x30c   : > { %v832_v40 = vadd.f32 %v819_v20, %v776_v35  ;;  %v833_v43 = vadd.f32 %v824_v25, %v777_v39  ;;  %v1196_v20 = vld [vmem:[%s2803_s10 + $0x38] sm:$0xff] }
 0x30d   : > { %v1405_v25 = vld [vmem:[%s2805_s12 + $0x38] sm:$0xff] }
 0x30f   : > { %v1056_v38 = vpop.permute.xlu0 %1055  ;;  %v1061_v42 = vpop.permute.xlu1 %1060 }
 0x3cd   : > { %v1026_v21 = vpop.f32.mrb[0].mxu1 }
 0x3ce   : > { %v1027_v23 = vadd.f32 %v1026_v21, %v977_v13  ;;  %v1899_v24 = vpop.f32.mrb[1].mxu1  ;;  %v1337_v13 = vld [vmem:[%s2804_s11 + $0x18] sm:$0xff]  ;;  %v1340_v21 = vld [vmem:[%s2804_s11 + $0x30] sm:$0xff] }
 0x3cf   : > { %v1029_v26 = vpop.f32.mrb[2].mxu1  ;;  %v1403_v24 = vld [vmem:[%s2805_s12 + $0x28] sm:$0xff] }
 0x3d0   : > { %v1036_v29 = vmax.f32 %v1027_v23, 0.0  ;;  %v1030_v30 = vadd.f32 %v1029_v26, %v982_v14  ;;  %v1900_v31 = vpop.f32.mrb[3].mxu1  ;;  %v1194_v14 = vld [vmem:[%s2803_s10 + $0x28] sm:$0xff]  ;;  %v1341_v23 = vld [vmem:[%s2804_s11 + $0x38] sm:$0xff]  ;;  %v1404_v26 = vld [vmem:[%s2805_s12 + $0x30] sm:$0xff] }
 0x3d2   : > { %v1048_v36 = vmul.f32 %v1041_v17, %v1036_v29  ;;  %v1037_v37 = vmax.f32 %v1030_v30, 0.0  ;;  %v1401_v17 = vld [vmem:[%s2805_s12 + $0x18] sm:$0xff] }
 0x3d4   : > { %v1063_v44 = vadd.f32 %v1056_v38, %v1048_v36  ;;  %v1049_v41 = vmul.f32 %v1046_v18, %v1037_v37  ;;  %v1338_v18 = vld [vmem:[%s2804_s11 + $0x20] sm:$0xff]  ;;  %v2011_v38 = vld [vmem:[%s2798_s5 + $0x10] sm:$0xff]  }
 0x3d6   : > { %v2441_v48 = vadd.f32 %v1063_v44, %v832_v40  ;;  %v1064_v45 = vadd.f32 %v1061_v42, %v1049_v41 }
 0x3d8   : > { %v2443_v46 = vadd.f32 %v1064_v45, %v833_v43  ;;  %v2445_v49 = vpack.c.bf16 %v1064_v45, %v1063_v44 }
 0x3da   : > { %v2000_v50 = vpack.i.bf16 %v2443_v46, %v2441_v48  ;;  %v1081_v51 = vpack.c.bf16 %v2443_v46, %v2441_v48 }
 0x3dc   : > { %2001 = vrot.lane.b32.xlu1 %v2000_v50, %s2840_s19  ;;  %1996 = vrot.lane.b32.xlu0 %v2000_v50, %s2839_s21  ;;  %s2743_s21 = scalar_lea.hbm %s2841_s0, %s1836_s22  ;;  %s2125_s19 = smov [#allocation2]  }
 0x3dd   : > { %s2060_s18 = sshll.u32 %s2125_s19, 4  ;;  %s2061_s18 = int_to_ptr.vmem [resolvable:$false] %s2060_s18 }
 0x3de   : > { %s2062_s22 = scalar_lea.vmem %s2061_s18, 2048  ;;  %p2063_p0 = scmp.lt.s32.totalorder %s2745_s30, %s2061_s18 }
 0x3df   : > { %p2064_p1 = scmp.lt.s32.totalorder %s2062_s22, %s2056_s24 }
 0x3e0   : > { %583 = vperm.xlu1 %1974, %v569_v52   ;;  %578 = vperm.xlu0 %1973, %v568_v53  }
 0x3e1   : > { %p2065_p2 = por %p2064_p1, %p2063_p0 }
 0x3e3   : > { %p2066_p3 = pnand %p2065_p2, %p2059_p13 }
 0x3e4   : > { %737 = vperm.xlu1 %1974, %v715_v54   ;;  %732 = vperm.xlu0 %1973, %v714_v55  }
 0x3e8   : > { %793 = vperm.xlu1 %1974, %v779_v56   ;;  %788 = vperm.xlu0 %1973, %v778_v57  }
 0x3ec   : > { %1096 = vperm.xlu1 %1974, %v1809_v58   ;;  %1091 = vperm.xlu0 %1973, %v1808_v59  }
 0x3f0   : > { %1160 = vperm.xlu1 %1974, %v1819_v61   ;;  %1155 = vperm.xlu0 %1973, %v1818_v62  }
 0x3f4   : > { %1175 = vperm.xlu1 %1974, %v1821_v63   ;;  %1170 = vperm.xlu0 %1973, %v1820_v0  }
 0x3f8   : > { %1204 = vperm.xlu1 %1974, %v1190_v2   ;;  %1199 = vperm.xlu0 %1973, %v1189_v3  }
 0x3fc   : > { %1214 = vperm.xlu1 %1974, %v1192_v4   ;;  %1209 = vperm.xlu0 %1973, %v1191_v5  }
 0x400   : > { %1357 = vperm.xlu1 %1974, %v1335_v7   ;;  %1352 = vperm.xlu0 %1973, %v1334_v8   ;;  %v2013_v8 = vld [vmem:[%s2802_s9 + $0x8] sm:$0xff]  }
 0x404   : > { %1362 = vperm.xlu1 %1974, %v1336_v9   ;;  %1219 = vperm.xlu0 %1973, %v1193_v10   ;;  %v2014_v9 = vld [vmem:[%s2802_s9 + $0x10] sm:$0xff]   ;;  %v2015_v10 = vld [vmem:[%s2802_s9 + $0x18] sm:$0xff]  }
 0x408   : > { %1413 = vperm.xlu1 %1974, %v1399_v11   ;;  %1408 = vperm.xlu0 %1973, %v1398_v12  }
 0x40c   : > { %1367 = vperm.xlu1 %1974, %v1337_v13   ;;  %1224 = vperm.xlu0 %1973, %v1194_v14  }
 0x410   : > { %1229 = vperm.xlu1 %1974, %v1195_v15   ;;  %1418 = vperm.xlu0 %1973, %v1400_v16  }
 0x414   : > { %1423 = vperm.xlu1 %1974, %v1401_v17   ;;  %1372 = vperm.xlu0 %1973, %v1338_v18  }
 0x418   : > { %1377 = vperm.xlu1 %1974, %v1339_v19   ;;  %1234 = vperm.xlu0 %1973, %v1196_v20  }
 0x41c   : > { %1382 = vperm.xlu1 %1974, %v1340_v21   ;;  %1428 = vperm.xlu0 %1973, %v1402_v22  }
 0x420   : > { %1387 = vperm.xlu1 %1974, %v1341_v23   ;;  %1433 = vperm.xlu0 %1973, %v1403_v24  }
 0x424   : > { %1443 = vperm.xlu1 %1974, %v1405_v25   ;;  %1438 = vperm.xlu0 %1973, %v1404_v26  }
 0x44e   : > { %v1997_v27 = vpop.permute.xlu0 %1996  ;;  %v2002_v32 = vpop.permute.xlu1 %2001 }
 0x44f   : > { %v1999_v29 = vunpack.i.h.bf16 %v1997_v27  ;;  %v1998_v30 = vunpack.i.l.bf16 %v1997_v27  ;;  %v2004_v35 = vunpack.i.h.bf16 %v2002_v32  ;;  %v2003_v36 = vunpack.i.l.bf16 %v2002_v32 }
 0x451   : > { %v1812_v31 = vpack.c.bf16 %v1999_v29, %v1998_v30  ;;  %v1815_v37 = vpack.c.bf16 %v2004_v35, %v2003_v36 }
 0x453   : > { %1902 = vmatpush3.bf16.msk.msra.mxu0 %vm2368_vm3, %v1812_v31 }
 0x454   : > { %1903 = vmatprep.subr.bf16.mxu0 %v2121_v34 }
 0x457   : > { %1904 = vmatpush3.bf16.msra.mxu0 %v1081_v51 }
 0x458   : > { %1905 = vmatprep.subr.bf16.mxu0 %v2121_v34 }
 0x45b   : > { %1906 = vmatpush3.bf16.msk.msra.mxu0 %vm2376_vm5, %v1815_v37 }
 0x45e   : > { %1908 = vmatmul.mubr.msk.bf16.vlgmr.msra.gmra.mrb[12].mxu0 %vm875_vm6, %v2011_v38 }
 0x45f   : > { %v584_v1 = vpop.permute.xlu1 %583  ;;  %v579_v39 = vpop.permute.xlu0 %578 }
 0x460   : > { %v687_v40 = vadd.f32 %v2317_v33, %v584_v1  ;;  %v684_v44 = vadd.f32 %v2315_v28, %v579_v39  ;;  %v2012_v28 = vld [vmem:[%s2802_s9] sm:$0xff]  }
 0x461   : > { %1919 = vmatprep.mubr.msk.bf16.mxu1 %vm636_vm0, %v2012_v28 }
 0x462   : > { %v723_v41 = vmax.f32 %v687_v40, 0.0  ;;  %v722_v42 = vmax.f32 %v684_v44, 0.0 }
 0x463   : > { %v738_v43 = vpop.permute.xlu1 %737  ;;  %v733_v34 = vpop.permute.xlu0 %732 }
 0x464   : > { %v771_v48 = vmul.f32 %v738_v43, %v723_v41  ;;  %v770_v45 = vmul.f32 %v733_v34, %v722_v42 }
 0x467   : > { %v794_v46 = vpop.permute.xlu1 %793  ;;  %v789_v50 = vpop.permute.xlu0 %788 }
 0x468   : > { %v827_v51 = vadd.f32 %v794_v46, %v771_v48  ;;  %v826_v52 = vadd.f32 %v789_v50, %v770_v45 }
 0x46a   : > { %v838_v6 = vpack.c.bf16 %v827_v51, %v826_v52 }
 0x46b   : > { %v1097_v33 = vpop.permute.xlu1 %1096  ;;  %v1092_v53 = vpop.permute.xlu0 %1091 }
 0x46c   : > { %1911 = vmatprep.subr.bf16.mxu1 %v838_v6 }
 0x46d   : > { %1912 = vmatpush3.bf16.msra.mxu1 %v838_v6 }
 0x46e   : > { %1913 = vmatprep.subr.bf16.mxu1 %v2389_v47 }
 0x46f   : > { %v1161_v55 = vpop.permute.xlu1 %1160  ;;  %v1156_v58 = vpop.permute.xlu0 %1155 }
 0x471   : > { %1914 = vmatpush3.bf16.msra.mxu1 %v2389_v47 }
 0x472   : > { %1915 = vmatprep.subr.bf16.mxu1 %v2445_v49 }
 0x473   : > { %v1176_v2 = vpop.permute.xlu1 %1175  ;;  %v1171_v3 = vpop.permute.xlu0 %1170 }
 0x475   : > { %1916 = vmatpush3.bf16.msra.mxu1 %v2445_v49 }
 0x477   : > { %v1200_v11 = vpop.permute.xlu0 %1199  ;;  %v1205_v12 = vpop.permute.xlu1 %1204 }
 0x47b   : > { %v1210_v13 = vpop.permute.xlu0 %1209  ;;  %v1215_v14 = vpop.permute.xlu1 %1214 }
 0x47f   : > { %v1353_v15 = vpop.permute.xlu0 %1352  ;;  %v1358_v16 = vpop.permute.xlu1 %1357 }
 0x483   : > { %v1220_v17 = vpop.permute.xlu0 %1219  ;;  %v1363_v18 = vpop.permute.xlu1 %1362 }
 0x487   : > { %v1409_v19 = vpop.permute.xlu0 %1408  ;;  %v1414_v20 = vpop.permute.xlu1 %1413 }
 0x48b   : > { %v1225_v21 = vpop.permute.xlu0 %1224  ;;  %v1368_v22 = vpop.permute.xlu1 %1367 }
 0x48f   : > { %v1419_v23 = vpop.permute.xlu0 %1418  ;;  %v1230_v24 = vpop.permute.xlu1 %1229 }
 0x493   : > { %v1373_v25 = vpop.permute.xlu0 %1372  ;;  %v1424_v26 = vpop.permute.xlu1 %1423 }
 0x497   : > { %v1235_v29 = vpop.permute.xlu0 %1234  ;;  %v1378_v40 = vpop.permute.xlu1 %1377 }
 0x49b   : > { %v1429_v42 = vpop.permute.xlu0 %1428 }
 0x531   : > { %v1141_v54 = vpop.f32.mrb[12].mxu0 }
 0x532   : > { %v1142_v56 = vadd.f32 %v1141_v54, %v1092_v53  ;;  %v1909_v57 = vpop.f32.mrb[13].mxu0 }
 0x533   : > { %v1144_v59 = vpop.f32.mrb[14].mxu0 }
 0x534   : > { %v1151_v61 = vmax.f32 %v1142_v56, 0.0  ;;  %v1145_v47 = vadd.f32 %v1144_v59, %v1097_v33  ;;  %v1910_v62 = vpop.f32.mrb[15].mxu0  ;;  %v1383_v33 = vpop.permute.xlu1 %1382 }
 0x536   : > { %v1163_v63 = vmul.f32 %v1156_v58, %v1151_v61  ;;  %v1152_v0 = vmax.f32 %v1145_v47, 0.0  ;;  %v1434_v61 = vpop.permute.xlu0 %1433 }
 0x538   : > { %v1164_v49 = vmul.f32 %v1161_v55, %v1152_v0  ;;  %v1178_v4 = vadd.f32 %v1171_v3, %v1163_v63 }
 0x53a   : > { %v1179_v5 = vadd.f32 %v1176_v2, %v1164_v49 }
 0x53c   : > { %v1180_v7 = vpack.c.bf16 %v1179_v5, %v1178_v4  ;;  %v1388_v4 = vpop.permute.xlu1 %1387  ;;  %v1439_v5 = vpop.permute.xlu0 %1438 }
 0x53e   : > { %1917 = vmatprep.subr.bf16.mxu1 %v1180_v7 }
 0x53f   : > { %1918 = vmatpush3.bf16.msra.mxu1 %v1180_v7 }
 0x542   : > { %1920 = vmatmul.mubr.msk.bf16.vlgmr.msra.gmra.mrb[4].mxu1 %vm636_vm0, %v2013_v8 }
 0x543   : > { %1923 = vmatprep.mubr.msk.bf16.mxu1 %vm636_vm0, %v2014_v9 }
 0x54a   : > { %1924 = vmatmul.mubr.msk.bf16.gmra.mrb[8].mxu1 %vm636_vm0, %v2015_v10  ;;  %v1444_v10 = vpop.permute.xlu1 %1443 }
 0x615   : > { %v1921_v27 = vpop.f32.mrb[4].mxu1 }
 0x616   : > { %v1312_v30 = vadd.f32 %v1921_v27, %v1210_v13  ;;  %v1303_v31 = vpop.f32.mrb[5].mxu1  ;;  %v1482_v27 = vld [vmem:[%s2806_s13 + $0x20] sm:$0xff] }
 0x617   : > { %v1304_v32 = vadd.f32 %v1303_v31, %v1200_v11  ;;  %v1922_v35 = vpop.f32.mrb[6].mxu1 }
 0x618   : > { %v1344_v36 = vmax.f32 %v1312_v30, 0.0  ;;  %v1315_v37 = vadd.f32 %v1922_v35, %v1215_v14  ;;  %v1306_v38 = vpop.f32.mrb[7].mxu1  ;;  %v1481_v30 = vld [vmem:[%s2806_s13 + $0x18] sm:$0xff] }
 0x619   : > { %v1342_v1 = vmax.f32 %v1304_v32, 0.0  ;;  %v1307_v39 = vadd.f32 %v1306_v38, %v1205_v12  ;;  %v1478_v12 = vld [vmem:[%s2806_s13] sm:$0xff] }
 0x61a   : > { %v1392_v43 = vmul.f32 %v1363_v18, %v1344_v36  ;;  %v1345_v34 = vmax.f32 %v1315_v37, 0.0 }
 0x61b   : > { %v1390_v44 = vmul.f32 %v1353_v15, %v1342_v1  ;;  %v1343_v41 = vmax.f32 %v1307_v39, 0.0  ;;  %v1479_v15 = vld [vmem:[%s2806_s13 + $0x8] sm:$0xff]  ;;  %v1484_v39 = vld [vmem:[%s2806_s13 + $0x30] sm:$0xff] }
 0x61c   : > { %v1393_v53 = vmul.f32 %v1368_v22, %v1345_v34  ;;  %v2601_v55 = vadd.f32 %v1419_v23, %v1392_v43 }
 0x61d   : > { %v1391_v48 = vmul.f32 %v1358_v16, %v1343_v41  ;;  %v1925_v45 = vpop.f32.mrb[8].mxu1  ;;  %v2596_v46 = vadd.f32 %v1409_v19, %v1390_v44  ;;  %v1480_v19 = vld [vmem:[%s2806_s13 + $0x10] sm:$0xff]  ;;  %v1483_v44 = vld [vmem:[%s2806_s13 + $0x28] sm:$0xff] }
 0x61e   : > { %v1328_v50 = vadd.f32 %v1925_v45, %v1230_v24  ;;  %v1319_v51 = vpop.f32.mrb[9].mxu1  ;;  %v2605_v63 = vadd.f32 %v1424_v26, %v1393_v53 }
 0x61f   : > { %v1320_v52 = vadd.f32 %v1319_v51, %v1220_v17  ;;  %v1926_v6 = vpop.f32.mrb[10].mxu1  ;;  %1454 = vadd.xlane.f32.xlu0 %v2596_v46  ;;  %v2599_v28 = vadd.f32 %v1414_v20, %v1391_v48 }
 0x620   : > { %v1322_v54 = vpop.f32.mrb[11].mxu1  ;;  %v1348_v56 = vmax.f32 %v1328_v50, 0.0  ;;  %v1331_v58 = vadd.f32 %v1926_v6, %v1235_v29  ;;  %v1485_v6 = vld [vmem:[%s2806_s13 + $0x38] sm:$0xff] }
 0x621   : > { %v1346_v57 = vmax.f32 %v1320_v52, 0.0  ;;  %v1323_v59 = vadd.f32 %v1322_v54, %v1225_v21  ;;  %1456 = vadd.xlane.f32.xlu1 %v2599_v28 }
 0x622   : > { %v1396_v0 = vmul.f32 %v1383_v33, %v1348_v56  ;;  %v1349_v49 = vmax.f32 %v1331_v58, 0.0 }
 0x623   : > { %v1394_v47 = vmul.f32 %v1373_v25, %v1346_v57  ;;  %v1347_v62 = vmax.f32 %v1323_v59, 0.0  ;;  %1458 = vadd.xlane.f32.xlu0 %v2601_v55 }
 0x624   : > { %v1397_v7 = vmul.f32 %v1388_v4, %v1349_v49  ;;  %v2611_v8 = vadd.f32 %v1439_v5, %v1396_v0  ;;  %v1528_v4 = vshrl.u32 %v834_v60, 7  ;;  %v1522_v60 = vld [vmem:[%s2808_s15 + $0x18] sm:$0xff] }
 0x625   : > { %v1395_v2 = vmul.f32 %v1378_v40, %v1347_v62  ;;  %v2607_v3 = vadd.f32 %v1429_v42, %v1394_v47 }
 0x626   : > { %v2617_v11 = vadd.f32 %v1444_v10, %v1397_v7  ;;  %v1516_v7 = vld [vmem:[%s2807_s14] sm:$0x1] }
 0x627   : > { %1462 = vadd.xlane.f32.xlu1 %v2607_v3  ;;  %1460 = vadd.xlane.f32.xlu0 %v2605_v63  ;;  %v2613_v9 = vadd.f32 %v1434_v61, %v1395_v2 }
 0x62b   : > { %1466 = vadd.xlane.f32.xlu1 %v2611_v8  ;;  %1464 = vadd.xlane.f32.xlu0 %v2613_v9 }
 0x62f   : > { %1468 = vadd.xlane.f32.xlu0 %v2617_v11 }
 0x6ac   : > { %v1455_v13 = vpop.xlane.xlu0 %1454 }
 0x6ad   : > { %v1470_v14 = vmul.f32 0.0078125, %v1455_v13 }
 0x6ae   : > { %v1457_v16 = vpop.xlane.xlu1 %1456 }
 0x6af   : > { %v1486_v17 = vmul.f32 %v1478_v12, %v1470_v14  ;;  %v1471_v18 = vmul.f32 0.0078125, %v1457_v16  ;;  %v1529_v12 = vsub.s32 0, %v1528_v4  ;;  %v1519_v16 = vld [vmem:[%s2808_s15] sm:$0xff] }
 0x6b0   : > { %v1459_v20 = vpop.xlane.xlu0 %1458 }
 0x6b1   : > { %v1487_v21 = vmul.f32 %v1479_v15, %v1471_v18  ;;  %v1472_v22 = vmul.f32 0.0078125, %v1459_v20  ;;  %v1495_v23 = vsel %vm1494_vm7, %v1486_v17, 0.0  ;;  %v1520_v15 = vld [vmem:[%s2808_s15 + $0x8] sm:$0xff]  ;;  %v1521_v18 = vld [vmem:[%s2808_s15 + $0x10] sm:$0xff] }
 0x6b3   : > { %v1496_v24 = vsel %vm1494_vm7, %v1487_v21, 0.0  ;;  %v1488_v25 = vmul.f32 %v1480_v19, %v1472_v22 }
 0x6b4   : > { %v1497_v26 = vadd.f32 %v1496_v24, %v1495_v23  ;;  %v1463_v29 = vpop.xlane.xlu1 %1462  ;;  %v1461_v31 = vpop.xlane.xlu0 %1460 }
 0x6b5   : > { %v1498_v32 = vsel %vm1494_vm7, %v1488_v25, 0.0  ;;  %v1474_v35 = vmul.f32 0.0078125, %v1463_v29  ;;  %v1473_v36 = vmul.f32 0.0078125, %v1461_v31  ;;  %v1524_v25 = vld [vmem:[%s2808_s15 + $0x28] sm:$0xff] }
 0x6b6   : > { %v1499_v1 = vadd.f32 %v1498_v32, %v1497_v26  ;;  %v1523_v26 = vld [vmem:[%s2808_s15 + $0x20] sm:$0xff]  ;;  %v1526_v32 = vld [vmem:[%s2808_s15 + $0x38] sm:$0xff] }
 0x6b7   : > { %v1490_v37 = vmul.f32 %v1482_v27, %v1474_v35  ;;  %v1489_v38 = vmul.f32 %v1481_v30, %v1473_v36  ;;  %v1525_v35 = vld [vmem:[%s2808_s15 + $0x30] sm:$0xff] }
 0x6b8   : > { %v1467_v40 = vpop.xlane.xlu1 %1466  ;;  %v1465_v41 = vpop.xlane.xlu0 %1464 }
 0x6b9   : > { %v1500_v42 = vsel %vm1494_vm7, %v1489_v38, 0.0  ;;  %v1476_v43 = vmul.f32 0.0078125, %v1467_v40  ;;  %v1475_v34 = vmul.f32 0.0078125, %v1465_v41  ;;  %v1502_v45 = vsel %vm1494_vm7, %v1490_v37, 0.0  ;;  %v1563_v41 = vld [vmem:[%s2809_s16] sm:$0xff] }
 0x6ba   : > { %v1501_v48 = vadd.f32 %v1500_v42, %v1499_v1 }
 0x6bb   : > { %v1492_v50 = vmul.f32 %v1484_v39, %v1476_v43  ;;  %v1491_v51 = vmul.f32 %v1483_v44, %v1475_v34  ;;  %v1564_v44 = vld [vmem:[%s2809_s16 + $0x8] sm:$0xff] }
 0x6bc   : > { %v1503_v52 = vadd.f32 %v1502_v45, %v1501_v48  ;;  %v1469_v33 = vpop.xlane.xlu0 %1468  ;;  %v1566_v45 = vld [vmem:[%s2809_s16 + $0x18] sm:$0xff] }
 0x6bd   : > { %v1504_v53 = vsel %vm1494_vm7, %v1491_v51, 0.0  ;;  %v1477_v54 = vmul.f32 0.0078125, %v1469_v33  ;;  %v1506_v57 = vsel %vm1494_vm7, %v1492_v50, 0.0  ;;  %v1565_v50 = vld [vmem:[%s2809_s16 + $0x10] sm:$0xff] }
 0x6be   : > { %v1505_v56 = vadd.f32 %v1504_v53, %v1503_v52 }
 0x6bf   : > { %v1493_v58 = vmul.f32 %v1485_v6, %v1477_v54 }
 0x6c0   : > { %v1507_v59 = vadd.f32 %v1506_v57, %v1505_v56 }
 0x6c1   : > { %v1508_v61 = vsel %vm1494_vm7, %v1493_v58, 0.0  ;;  %v1568_v58 = vld [vmem:[%s2809_s16 + $0x28] sm:$0xff] }
 0x6c2   : > { %v1509_v47 = vadd.f32 %v1508_v61, %v1507_v59  ;;  %v1567_v59 = vld [vmem:[%s2809_s16 + $0x20] sm:$0xff] }
 0x6c4   : > { %v1510_v62 = vrot.slane %v1509_v47, 4 }
 0x6c6   : > { %v1511_v0 = vadd.f32 %v1510_v62, %v1509_v47 }
 0x6c8   : > { %v1512_v49 = vrot.slane %v1511_v0, 2 }
 0x6ca   : > { %v1513_v2 = vadd.f32 %v1512_v49, %v1511_v0 }
 0x6cc   : > { %v1514_v5 = vrot.slane %v1513_v2, 1 }
 0x6ce   : > { %v1515_v10 = vadd.f32 %v1514_v5, %v1513_v2 }
 0x6d0   : > { %v1517_v13 = vadd.f32 %v1516_v7, %v1515_v10  ;;  %v1570_v7 = vld [vmem:[%s2809_s16 + $0x38] sm:$0xff]  ;;  %v1569_v10 = vld [vmem:[%s2809_s16 + $0x30] sm:$0xff] }
 0x6d2   : > { %v1518_v14 = vmax.f32 %v1517_v13, 0.0 }
 0x6d4   : > { %v1530_v17 = vrot.slane %v1518_v14, %v1529_v12 }
 0x6d6   : > { %v1532_v19 = vmul.f32 %v1530_v17, %v1520_v15  ;;  %v1531_v20 = vmul.f32 %v1530_v17, %v1519_v16  ;;  %v1534_v23 = vmul.f32 %v1530_v17, %v1522_v60  ;;  %v1533_v24 = vmul.f32 %v1530_v17, %v1521_v18 }
 0x6d7   : > { %v1536_v30 = vmul.f32 %v1530_v17, %v1524_v25  ;;  %v1535_v31 = vmul.f32 %v1530_v17, %v1523_v26  ;;  %v1538_v38 = vmul.f32 %v1530_v17, %v1526_v32  ;;  %v1537_v1 = vmul.f32 %v1530_v17, %v1525_v35 }
 0x6d8   : > { %v1542_v21 = vsel %vm1494_vm7, %v1532_v19, 0.0  ;;  %v1539_v22 = vsel %vm1494_vm7, %v1531_v20, 0.0  ;;  %v1548_v27 = vsel %vm1494_vm7, %v1534_v23, 0.0  ;;  %v1545_v29 = vsel %vm1494_vm7, %v1533_v24, 0.0 }
 0x6d9   : > { %1543 = vadd.xlane.f32.xlu0 %v1542_v21  ;;  %1540 = vadd.xlane.f32.xlu1 %v1539_v22  ;;  %v1554_v36 = vsel %vm1494_vm7, %v1536_v30, 0.0  ;;  %v1551_v37 = vsel %vm1494_vm7, %v1535_v31, 0.0  ;;  %v1560_v39 = vsel %vm1494_vm7, %v1538_v38, 0.0  ;;  %v1557_v40 = vsel %vm1494_vm7, %v1537_v1, 0.0 }
 0x6dd   : > { %1549 = vadd.xlane.f32.xlu0 %v1548_v27  ;;  %1546 = vadd.xlane.f32.xlu1 %v1545_v29 }
 0x6e1   : > { %1555 = vadd.xlane.f32.xlu0 %v1554_v36  ;;  %1552 = vadd.xlane.f32.xlu1 %v1551_v37 }
 0x6e5   : > { %1561 = vadd.xlane.f32.xlu0 %v1560_v39  ;;  %1558 = vadd.xlane.f32.xlu1 %v1557_v40 }
 0x766   : > { %v1544_v42 = vpop.xlane.xlu0 %1543  ;;  %v1541_v43 = vpop.xlane.xlu1 %1540 }
 0x767   : > { %v1572_v34 = vadd.f32 %v1564_v44, %v1544_v42  ;;  %v1571_v48 = vadd.f32 %v1563_v41, %v1541_v43 }
 0x769   : > { %v1580_v51 = vsub.f32 0.0, %v1572_v34  ;;  %v1579_v52 = vsub.f32 0.0, %v1571_v48 }
 0x76a   : > { %v1550_v6 = vpop.xlane.xlu0 %1549  ;;  %v1547_v33 = vpop.xlane.xlu1 %1546 }
 0x76b   : > { %v1589_v53 = vmul.f32 1.442695, %v1580_v51  ;;  %v1587_v54 = vmul.f32 1.442695, %v1579_v52  ;;  %v1574_v56 = vadd.f32 %v1566_v45, %v1550_v6  ;;  %v1573_v57 = vadd.f32 %v1565_v50, %v1547_v33 }
 0x76d   : > { %2016 = vpow2.f32 %v1589_v53  ;;  %v1582_v61 = vsub.f32 0.0, %v1574_v56  ;;  %v1581_v47 = vsub.f32 0.0, %v1573_v57  ;;  %v2048_v53 = vld [vmem:[%s2284_s17 + $0x8] sm:$0xff]  ;;  %v2049_v56 = vld [vmem:[%s2284_s17] sm:$0xff] }
 0x76e   : > { %2018 = vpow2.f32 %v1587_v54  ;;  %v1556_v62 = vpop.xlane.xlu0 %1555  ;;  %v1553_v0 = vpop.xlane.xlu1 %1552 }
 0x76f   : > { %v1593_v49 = vmul.f32 1.442695, %v1582_v61  ;;  %v1591_v2 = vmul.f32 1.442695, %v1581_v47  ;;  %v1576_v4 = vadd.f32 %v1568_v58, %v1556_v62  ;;  %v1575_v5 = vadd.f32 %v1567_v59, %v1553_v0  ;;  %v2050_v59 = vld [vmem:[%s2284_s17 + $0x10] sm:$0xff] }
 0x771   : > { %2020 = vpow2.f32 %v1593_v49  ;;  %v1584_v12 = vsub.f32 0.0, %v1576_v4  ;;  %v1583_v13 = vsub.f32 0.0, %v1575_v5  ;;  %v2051_v49 = vld [vmem:[%s2284_s17 + $0x20] sm:$0xff]  ;;  %v2052_v4 = vld [vmem:[%s2284_s17 + $0x18] sm:$0xff] }
 0x772   : > { %2022 = vpow2.f32 %v1591_v2  ;;  %v1562_v14 = vpop.xlane.xlu0 %1561  ;;  %v1559_v15 = vpop.xlane.xlu1 %1558 }
 0x773   : > { %v1597_v16 = vmul.f32 1.442695, %v1584_v12  ;;  %v1595_v17 = vmul.f32 1.442695, %v1583_v13  ;;  %v1578_v60 = vadd.f32 %v1570_v7, %v1562_v14  ;;  %v1577_v18 = vadd.f32 %v1569_v10, %v1559_v15  ;;  %v2054_v14 = vld [vmem:[%s2284_s17 + $0x30] sm:$0xff] }
 0x775   : > { %2024 = vpow2.f32 %v1597_v16  ;;  %v1586_v19 = vsub.f32 0.0, %v1578_v60  ;;  %v1585_v20 = vsub.f32 0.0, %v1577_v18 }
 0x776   : > { %2026 = vpow2.f32 %v1595_v17 }
 0x777   : > { %v2017_v21 = vpop.eup %2016  ;;  %v1601_v22 = vmul.f32 1.442695, %v1586_v19  ;;  %v1599_v25 = vmul.f32 1.442695, %v1585_v20 }
 0x778   : > { %v2019_v23 = vpop.eup %2018  ;;  %v1604_v24 = vadd.f32 1.0, %v2017_v21 }
 0x779   : > { %v1603_v26 = vadd.f32 1.0, %v2019_v23  ;;  %2028 = vpow2.f32 %v1601_v22 }
 0x77a   : > { %2030 = vrcp.f32 %v1604_v24 }
 0x77b   : > { %v2021_v27 = vpop.eup %2020  ;;  %2032 = vrcp.f32 %v1603_v26 }
 0x77c   : > { %v2023_v29 = vpop.eup %2022  ;;  %2034 = vpow2.f32 %v1599_v25  ;;  %v1606_v31 = vadd.f32 1.0, %v2021_v27 }
 0x77d   : > { %v1605_v30 = vadd.f32 1.0, %v2023_v29 }
 0x77f   : > { %v2025_v32 = vpop.eup %2024  ;;  %2036 = vrcp.f32 %v1605_v30 }
 0x780   : > { %v2027_v35 = vpop.eup %2026  ;;  %2038 = vrcp.f32 %v1606_v31  ;;  %v1608_v38 = vadd.f32 1.0, %v2025_v32 }
 0x781   : > { %v1607_v36 = vadd.f32 1.0, %v2027_v35 }
 0x783   : > { %v2029_v37 = vpop.eup %2028  ;;  %2040 = vrcp.f32 %v1607_v36 }
 0x784   : > { %v2031_v1 = vpop.eup %2030  ;;  %2042 = vrcp.f32 %v1608_v38  ;;  %v1610_v44 = vadd.f32 1.0, %v2029_v37 }
 0x785   : > { %v2033_v39 = vpop.eup %2032  ;;  %1634 = vperm.xlu0 %1973, %v2031_v1  }
 0x786   : > { %v2035_v40 = vpop.eup %2034  ;;  %1629 = vperm.xlu1 %1974, %v2033_v39  }
 0x787   : > { %v1609_v41 = vadd.f32 1.0, %v2035_v40 }
 0x789   : > { %v2037_v42 = vpop.eup %2036  ;;  %2044 = vrcp.f32 %v1609_v41 }
 0x78a   : > { %1639 = vperm.xlu1 %1974, %v2037_v42   ;;  %2046 = vrcp.f32 %v1610_v44  ;;  %v2039_v43 = vpop.eup %2038 }
 0x78d   : > { %v2041_v34 = vpop.eup %2040 }
 0x78e   : > { %1644 = vperm.xlu1 %1974, %v2039_v43   ;;  %1649 = vperm.xlu0 %1973, %v2041_v34   ;;  %v2043_v48 = vpop.eup %2042 }
 0x792   : > { %1654 = vperm.xlu1 %1974, %v2043_v48  }
 0x793   : > { %v2045_v45 = vpop.eup %2044 }
 0x794   : > { %1659 = vperm.xlu0 %1973, %v2045_v45   ;;  %v2047_v50 = vpop.eup %2046 }
 0x796   : > { %1664 = vperm.xlu1 %1974, %v2047_v50  }
 0x804   : > { %v1635_v51 = vpop.permute.xlu0 %1634 }
 0x805   : > { %v1668_v52 = vmul.f32 %v1635_v51, %v2599_v28  ;;  %v1630_v6 = vpop.permute.xlu1 %1629 }
 0x806   : > { %v1667_v33 = vmul.f32 %v1630_v6, %v2596_v46 }
 0x807   : > { %v1676_v54 = vadd.f32 %v2048_v53, %v1668_v52 }
 0x808   : > { %v1675_v57 = vadd.f32 %v2049_v56, %v1667_v33 }
 0x809   : > { %1684 = vst [vmem:[%s2719_s29 + $0x8] sm:$0xff] %v1676_v54  ;;  %v1640_v58 = vpop.permute.xlu1 %1639 }
 0x80a   : > { %1683 = vst [vmem:[%s2719_s29] sm:$0xff] %v1675_v57  ;;  %v1669_v28 = vmul.f32 %v1640_v58, %v2601_v55 }
 0x80c   : > { %v1677_v46 = vadd.f32 %v2050_v59, %v1669_v28 }
 0x80d   : > { %v1650_v61 = vpop.permute.xlu0 %1649  ;;  %v1645_v47 = vpop.permute.xlu1 %1644 }
 0x80e   : > { %1685 = vst [vmem:[%s2719_s29 + $0x10] sm:$0xff] %v1677_v46  ;;  %v1671_v62 = vmul.f32 %v1650_v61, %v2607_v3  ;;  %v1670_v0 = vmul.f32 %v1645_v47, %v2605_v63  ;;  %v2053_v3 = vld [vmem:[%s2284_s17 + $0x28] sm:$0xff] }
 0x810   : > { %v1679_v2 = vadd.f32 %v2051_v49, %v1671_v62  ;;  %v1678_v5 = vadd.f32 %v2052_v4, %v1670_v0 }
 0x811   : > { %v1655_v7 = vpop.permute.xlu1 %1654 }
 0x812   : > { %1687 = vst [vmem:[%s2719_s29 + $0x20] sm:$0xff] %v1679_v2  ;;  %1686 = vst [vmem:[%s2719_s29 + $0x18] sm:$0xff] %v1678_v5  ;;  %v1672_v55 = vmul.f32 %v1655_v7, %v2613_v9 }
 0x813   : > { %v1660_v10 = vpop.permute.xlu0 %1659 }
 0x814   : > { %v1673_v12 = vmul.f32 %v1660_v10, %v2611_v8  ;;  %v1680_v63 = vadd.f32 %v2053_v3, %v1672_v55  ;;  %v2055_v8 = vld [vmem:[%s2284_s17 + $0x38] sm:$0xff] }
 0x815   : > { %v1665_v13 = vpop.permute.xlu1 %1664 }
 0x816   : > { %v1681_v15 = vadd.f32 %v2054_v14, %v1673_v12  ;;  %1688 = vst [vmem:[%s2719_s29 + $0x28] sm:$0xff] %v1680_v63  ;;  %v1674_v16 = vmul.f32 %v1665_v13, %v2617_v11 }
 0x818   : > { %1689 = vst [vmem:[%s2719_s29 + $0x30] sm:$0xff] %v1681_v15  ;;  %v1682_v9 = vadd.f32 %v2055_v8, %v1674_v16 }
 0x81a   : > { %1690 = vst [vmem:[%s2719_s29 + $0x38] sm:$0xff] %v1682_v9 }
 0x81b   : > { %2069 = shalt.err (!%p2066_p3)
}
 0x81c   : > { %s2070_s17 = scalar_lea.hbm %s2743_s21, 1024  ;;  %s2074_s26 = scalar_lea.hbm %s2841_s0, 2048 }
 0x81d   : > { %p2071_p4 = scmp.ne.s32.totalorder %s2743_s21, %s2070_s17  ;;  %p2075_p9 = scmp.lt.u32.totalorder %s2743_s21, %s2841_s0 }
 0x81e   : > { %p2076_p10 = scmp.lt.u32.totalorder %s2074_s26, %s2070_s17  ;;  %p2078_p12 = scmp.lt.u32.totalorder %s2070_s17, %s2743_s21 }
 0x81f   : > { %p2072_p7 = pnand %p2071_p4, %p2256_p5 }
 0x820   : > { %p2077_p11 = por %p2076_p10, %p2075_p9 }
 0x821   : > { %p2073_p8 = pneg %p2072_p7 }
 0x822   : > { %p2079_p13 = por %p2078_p12, %p2077_p11 }
 0x824   : > { %p2080_p0 = pnand %p2079_p13, %p2073_p8 }
 0x826   : > { %2083 = shalt.err (!%p2080_p0)
}
 0x827   : > { %s2126_s24 = smov 128   ;;  %s2127_s18 = smov 8  }
 0x828   : > { %1927 = dma.vmem_to_hbm [thread:$0]  (%p2256_p5), %s2745_s30, 1024, %s2743_s21, %s2752_s28, %s2126_s24, %s2126_s24, %s2127_s18  }
 0x829 PF: > { %s2842_s22 = sld [smem:[#allocation7_spill]]  ;;  %s2843_s20 = sld [smem:[#allocation5_spill]] }
 0x82f   : > { %p1933_p1 = scmp.ge.s32.totalorder %s2842_s22, 2  ;;  %s1720_s27 = sand.u32 1, %s2843_s20  }
 0x830   : > { %s1721_s17 = scalar_lea.sflag [#allocation3], %s1720_s27 }
 0x831   : > { %p1930_p2 = pnand %p1933_p1, %p2260_p6 }
 0x833   : > { %2101 = dma.done.wait (!%p1930_p2), %s1721_s17, 1024  }
 0x834   : > { %2103 = vsyncadd (!%p1930_p2), %s1721_s17, 4294966272  ;;  %s2845_s27 = sld [smem:[#allocation8_spill]]  ;;  %s2846_s26 = sld [smem:[#allocation6_spill]] }
 0x835   : > { %s2847_s19 = sld [smem:[#allocation9_spill]]  ;;  %s2848_s24 = smov %s2110_s25 }
 0x83a   : > { %p27_p3 = scmp.ge.s32.totalorder %s2845_s27, 4   ;;  %s2849_s25 = smov %s2846_s26 }
 0x83b   : > { %s2850_s26 = smov %s2847_s19 }
 0x83c   :  { %29 = sbr.rel (!%p27_p3) target bundleno = 7 (0x7), region = 131 }
 0x843   :  { %1726 = vsyncpa [#allocation3], 1 }
 0x844   :  { %1728 = vsyncpa [#allocation3 + $0x1], 1 }

</bundles_post_ra>
